<compile_context>
chip_gen: v6e
topology: v6e:2x2x1
jax: 0.10.0
libtpu: 0.0.40
codegen_flags: <defaults>
</compile_context>

<pallas_src>
import jax
import jax.numpy as jnp
from jax.experimental import pallas as pl
from jax.experimental.pallas import tpu as pltpu

# ---- model dimensions (small, consistent with the module) ----
VOCAB = 32          # params.vocab_size
EMBED = 32          # params.embedding_dim
HIDDEN = 32         # params.lstm_hidden_dim
NUM_TAGS = 6        # params.number_of_tags
OUT_TAGS = NUM_TAGS + 2   # LSTM projects to number_of_tags + 2 (START/STOP slots)
B = 2               # batch
S = 8               # max sequence length
BP = 8              # batch padded to one full sublane tile


def lstm_logsoftmax_kernel(tok_ref,      # SMEM [B, S] int32   (scalar prefetch)
                           proj_ref,     # VMEM [VOCAB, 4H]    fused Embed@W_ih^T + b (gate-scaled)
                           whh_t_ref,    # VMEM [H, 4H]        gate-scaled W_hh^T
                           wfc_t_ref,    # VMEM [H, T]         W_fc^T
                           bfc_ref,      # VMEM [1, T]         b_fc
                           out_ref,      # VMEM [B*S, T]       batch-first log-probs
                           xp_scratch,   # VMEM [S*BP, 4H]     gathered input projections
                           h_scratch):   # VMEM [S*BP, H]      per-step hidden states
    H = HIDDEN
    w_hh_t = whh_t_ref[...]              # loop-invariant RHS (weight-stationary)

    # ---------------- prologue: token -> fused projection row gather ---------
    # 16 SMEM-indexed single-row reads from the 16 KB proj table.  Padded
    # sublanes are zeroed once so the padded batch rows stay exactly 0.
    xp_scratch[...] = jnp.zeros_like(xp_scratch)
    for t in range(S):
        for b in range(B):
            tok = tok_ref[b, t]                                   # SMEM scalar
            row = proj_ref[pl.ds(tok, 1), :]                      # [1, 4H]
            xp_scratch[t * BP + b: t * BP + b + 1, :] = row

    # ---------------- recurrence: fully unrolled, 8-sublane padded -----------
    h = jnp.zeros((BP, H), jnp.float32)
    c = jnp.zeros((BP, H), jnp.float32)
    for t in range(S):
        xp = xp_scratch[t * BP:(t + 1) * BP, :]                   # aligned [8, 4H] vld
        gates = xp + jnp.dot(h, w_hh_t,
                             preferred_element_type=jnp.float32)  # [8, 4H]
        # ONE transcendental over the full gate vreg; i/f/o columns were
        # pre-scaled by 0.5, so sigmoid(x) = 0.5 * tanh(x/2) + 0.5 (exact).
        th = jnp.tanh(gates)
        i = 0.5 * th[:, 0:H] + 0.5
        f = 0.5 * th[:, H:2 * H] + 0.5
        g = th[:, 2 * H:3 * H]                                    # tanh(g), unscaled cols
        o = 0.5 * th[:, 3 * H:4 * H] + 0.5
        c = f * c + i * g
        h = o * jnp.tanh(c)
        h_scratch[t * BP:(t + 1) * BP, :] = h                     # full-tile store

    # ---------------- epilogue: batch-first reorder, FC, log_softmax ---------
    # Reorder (t, b) -> (b, t) with static single-row reads (epilogue only),
    # then ONE matmul, ONE log_softmax, ONE store for the whole output.
    rows = []
    for b in range(B):
        for t in range(S):
            rows.append(h_scratch[t * BP + b: t * BP + b + 1, :])  # [1, H]
    h_bf = jnp.concatenate(rows, axis=0)                           # [B*S, H]

    logits = (jnp.dot(h_bf, wfc_t_ref[...],
                      preferred_element_type=jnp.float32)
              + bfc_ref[...])                                      # [B*S, T]
    m = jnp.max(logits, axis=1, keepdims=True)
    z = logits - m
    out_ref[...] = z - jnp.log(jnp.sum(jnp.exp(z), axis=1, keepdims=True))


def net_forward(tokens, params):
    """tokens: int32 [B, S] -> log-probs float32 [B*S, OUT_TAGS] (batch-first)."""
    table, w_ih, w_hh, b_ih, b_hh, w_fc, b_fc = params
    H = HIDDEN

    # Gate-column scaling (i, f, o columns * 0.5; g columns * 1) so the kernel
    # can use a single tanh per step.  Weight-only precompute in the wrapper.
    scale = jnp.concatenate([jnp.full((H,), 0.5, jnp.float32),
                             jnp.full((H,), 0.5, jnp.float32),
                             jnp.ones((H,), jnp.float32),
                             jnp.full((H,), 0.5, jnp.float32)])     # [4H]
    w_ih_t = jnp.transpose(w_ih).astype(jnp.float32) * scale[None, :]   # [E, 4H]
    w_hh_t = jnp.transpose(w_hh).astype(jnp.float32) * scale[None, :]   # [H, 4H]
    b = ((b_ih + b_hh).astype(jnp.float32) * scale)[None, :]            # [1, 4H]

    # Fused embedding + input projection table: [VOCAB, 4H] (16 KB).
    proj_table = jnp.dot(table.astype(jnp.float32), w_ih_t) + b

    w_fc_t = jnp.transpose(w_fc).astype(jnp.float32)                    # [H, T]
    bfc = b_fc.reshape(1, OUT_TAGS).astype(jnp.float32)

    out = pl.pallas_call(
        lstm_logsoftmax_kernel,
        out_shape=jax.ShapeDtypeStruct((B * S, OUT_TAGS), jnp.float32),
        grid_spec=pltpu.PrefetchScalarGridSpec(
            num_scalar_prefetch=1,                # tokens -> SMEM
            grid=(1,),
            in_specs=[
                pl.BlockSpec((VOCAB, 4 * HIDDEN), lambda i, tok: (0, 0)),
                pl.BlockSpec((HIDDEN, 4 * HIDDEN), lambda i, tok: (0, 0)),
                pl.BlockSpec((HIDDEN, OUT_TAGS), lambda i, tok: (0, 0)),
                pl.BlockSpec((1, OUT_TAGS), lambda i, tok: (0, 0)),
            ],
            out_specs=pl.BlockSpec((B * S, OUT_TAGS), lambda i, tok: (0, 0)),
            scratch_shapes=[
                pltpu.VMEM((S * BP, 4 * HIDDEN), jnp.float32),
                pltpu.VMEM((S * BP, HIDDEN), jnp.float32),
            ],
        ),
        compiler_params=pltpu.CompilerParams(
            dimension_semantics=("arbitrary",)),
    )(tokens.astype(jnp.int32), proj_table, w_hh_t, w_fc_t, bfc)

    return out      # already [B*S, OUT_TAGS] batch-first; no wrapper reshuffle


def net_forward_ref(tokens, params):
    """Pure-JAX reference: Embedding -> LSTM -> Linear -> log_softmax(dim=1)."""
    table, w_ih, w_hh, b_ih, b_hh, w_fc, b_fc = params
    hi = jax.lax.Precision.HIGHEST
    emb = table[tokens]                                   # [B, S, E]
    x_tm = jnp.transpose(emb, (1, 0, 2))                  # [S, B, E]

    def step(carry, x_t):
        h, c = carry
        gates = (jnp.dot(x_t, w_ih.T, precision=hi) + b_ih
                 + jnp.dot(h, w_hh.T, precision=hi) + b_hh)
        i, f, g, o = jnp.split(gates, 4, axis=1)          # PyTorch order i,f,g,o
        i, f, o = jax.nn.sigmoid(i), jax.nn.sigmoid(f), jax.nn.sigmoid(o)
        g = jnp.tanh(g)
        c = f * c + i * g
        h = o * jnp.tanh(c)
        return (h, c), h

    h0 = jnp.zeros((tokens.shape[0], HIDDEN), jnp.float32)
    (_, _), hs = jax.lax.scan(step, (h0, h0), x_tm)       # [S, B, H]
    h_bf = jnp.transpose(hs, (1, 0, 2)).reshape(-1, HIDDEN)
    logits = jnp.dot(h_bf, w_fc.T, precision=hi) + b_fc
    return jax.nn.log_softmax(logits, axis=1)


def init_params(key):
    ks = jax.random.split(key, 7)
    table = 0.1 * jax.random.normal(ks[0], (VOCAB, EMBED), jnp.float32)
    w_ih = 0.1 * jax.random.normal(ks[1], (4 * HIDDEN, EMBED), jnp.float32)
    w_hh = 0.1 * jax.random.normal(ks[2], (4 * HIDDEN, HIDDEN), jnp.float32)
    b_ih = 0.1 * jax.random.normal(ks[3], (4 * HIDDEN,), jnp.float32)
    b_hh = 0.1 * jax.random.normal(ks[4], (4 * HIDDEN,), jnp.float32)
    w_fc = 0.1 * jax.random.normal(ks[5], (OUT_TAGS, HIDDEN), jnp.float32)
    b_fc = 0.1 * jax.random.normal(ks[6], (OUT_TAGS,), jnp.float32)
    return (table, w_ih, w_hh, b_ih, b_hh, w_fc, b_fc)


if __name__ == "__main__":
    key = jax.random.PRNGKey(0)
    pkey, tkey = jax.random.split(key)
    params = init_params(pkey)
    tokens = jax.random.randint(tkey, (B, S), 0, VOCAB, dtype=jnp.int32)

    out = jax.block_until_ready(jax.jit(net_forward)(tokens, params))
    ref = jax.block_until_ready(jax.jit(net_forward_ref)(tokens, params))

    assert out.shape == (B * S, OUT_TAGS)
    # log_softmax rows must (exp-)sum to ~1
    row_sums = jnp.sum(jnp.exp(out), axis=1)
    assert bool(jnp.all(jnp.abs(row_sums - 1.0) < 1e-4))
    # match the pure-JAX LSTM reference
    assert bool(jnp.allclose(out, ref, atol=2e-3, rtol=2e-3))
    print("KERNEL_OK")
</pallas_src>

<mosaic_0001>
module attributes {stable_mosaic.version = 11 : i64} {
  func.func @lstm_logsoftmax_kernel(%arg0: i32, %arg1: memref<2x8xi32, #tpu.memory_space<smem>>, %arg2: memref<32x128xf32, #tpu.memory_space<vmem>>, %arg3: memref<32x128xf32, #tpu.memory_space<vmem>>, %arg4: memref<32x8xf32, #tpu.memory_space<vmem>>, %arg5: memref<1x8xf32, #tpu.memory_space<vmem>>, %arg6: memref<16x8xf32, #tpu.memory_space<vmem>>, %arg7: memref<64x128xf32, #tpu.memory_space<vmem>>, %arg8: memref<64x32xf32, #tpu.memory_space<vmem>>) attributes {dimension_semantics = [#tpu.dimension_semantics<arbitrary>], iteration_bounds = array<i64: 1>, scalar_prefetch = 1 : i64, scratch_operands = 2 : i64, tpu.core_type = #tpu.core_type<tc>, window_params = [{pipeline_mode = #tpu.pipeline_mode<synchronous>, transform_indices = @transform_0, window_bounds = array<i64: 32, 128>}, {pipeline_mode = #tpu.pipeline_mode<synchronous>, transform_indices = @transform_1, window_bounds = array<i64: 32, 128>}, {pipeline_mode = #tpu.pipeline_mode<synchronous>, transform_indices = @transform_2, window_bounds = array<i64: 32, 8>}, {pipeline_mode = #tpu.pipeline_mode<synchronous>, transform_indices = @transform_3, window_bounds = array<i64: 1, 8>}, {pipeline_mode = #tpu.pipeline_mode<synchronous>, transform_indices = @transform_4, window_bounds = array<i64: 16, 8>}]} {
    %c0 = arith.constant 0 : index
    %c0_0 = arith.constant 0 : index
    %0 = vector.load %arg3[%c0, %c0_0] : memref<32x128xf32, #tpu.memory_space<vmem>>, vector<32x128xf32>
    %cst = arith.constant 0.000000e+00 : f32
    %1 = vector.broadcast %cst : f32 to vector<64x128xf32>
    %c0_1 = arith.constant 0 : index
    %c0_2 = arith.constant 0 : index
    %2 = vector.load %arg7[%c0_1, %c0_2] : memref<64x128xf32, #tpu.memory_space<vmem>>, vector<64x128xf32>
    tpu.vector_store %arg7[%c0_1, %c0_2], %1 {strides = array<i32>} : memref<64x128xf32, #tpu.memory_space<vmem>>, vector<64x128xf32>,
    %c0_3 = arith.constant 0 : index
    %c0_4 = arith.constant 0 : index
    %3 = memref.load %arg1[%c0_3, %c0_4] : memref<2x8xi32, #tpu.memory_space<smem>>
    %4 = arith.index_cast %3 : i32 to index
    %c0_5 = arith.constant 0 : index
    %5 = vector.load %arg2[%4, %c0_5] : memref<32x128xf32, #tpu.memory_space<vmem>>, vector<1x128xf32>
    %c0_6 = arith.constant 0 : index
    %c0_7 = arith.constant 0 : index
    %6 = vector.load %arg7[%c0_6, %c0_7] : memref<64x128xf32, #tpu.memory_space<vmem>>, vector<1x128xf32>
    tpu.vector_store %arg7[%c0_6, %c0_7], %5 {strides = array<i32>} : memref<64x128xf32, #tpu.memory_space<vmem>>, vector<1x128xf32>,
    %c1 = arith.constant 1 : index
    %c0_8 = arith.constant 0 : index
    %7 = memref.load %arg1[%c1, %c0_8] : memref<2x8xi32, #tpu.memory_space<smem>>
    %8 = arith.index_cast %7 : i32 to index
    %c0_9 = arith.constant 0 : index
    %9 = vector.load %arg2[%8, %c0_9] : memref<32x128xf32, #tpu.memory_space<vmem>>, vector<1x128xf32>
    %c1_10 = arith.constant 1 : index
    %c0_11 = arith.constant 0 : index
    %10 = vector.load %arg7[%c1_10, %c0_11] : memref<64x128xf32, #tpu.memory_space<vmem>>, vector<1x128xf32>
    tpu.vector_store %arg7[%c1_10, %c0_11], %9 {strides = array<i32>} : memref<64x128xf32, #tpu.memory_space<vmem>>, vector<1x128xf32>,
    %c0_12 = arith.constant 0 : index
    %c1_13 = arith.constant 1 : index
    %11 = memref.load %arg1[%c0_12, %c1_13] : memref<2x8xi32, #tpu.memory_space<smem>>
    %12 = arith.index_cast %11 : i32 to index
    %c0_14 = arith.constant 0 : index
    %13 = vector.load %arg2[%12, %c0_14] : memref<32x128xf32, #tpu.memory_space<vmem>>, vector<1x128xf32>
    %c8 = arith.constant 8 : index
    %c0_15 = arith.constant 0 : index
    %14 = vector.load %arg7[%c8, %c0_15] : memref<64x128xf32, #tpu.memory_space<vmem>>, vector<1x128xf32>
    tpu.vector_store %arg7[%c8, %c0_15], %13 {strides = array<i32>} : memref<64x128xf32, #tpu.memory_space<vmem>>, vector<1x128xf32>,
    %c1_16 = arith.constant 1 : index
    %c1_17 = arith.constant 1 : index
    %15 = memref.load %arg1[%c1_16, %c1_17] : memref<2x8xi32, #tpu.memory_space<smem>>
    %16 = arith.index_cast %15 : i32 to index
    %c0_18 = arith.constant 0 : index
    %17 = vector.load %arg2[%16, %c0_18] : memref<32x128xf32, #tpu.memory_space<vmem>>, vector<1x128xf32>
    %c9 = arith.constant 9 : index
    %c0_19 = arith.constant 0 : index
    %18 = vector.load %arg7[%c9, %c0_19] : memref<64x128xf32, #tpu.memory_space<vmem>>, vector<1x128xf32>
    tpu.vector_store %arg7[%c9, %c0_19], %17 {strides = array<i32>} : memref<64x128xf32, #tpu.memory_space<vmem>>, vector<1x128xf32>,
    %c0_20 = arith.constant 0 : index
    %c2 = arith.constant 2 : index
    %19 = memref.load %arg1[%c0_20, %c2] : memref<2x8xi32, #tpu.memory_space<smem>>
    %20 = arith.index_cast %19 : i32 to index
    %c0_21 = arith.constant 0 : index
    %21 = vector.load %arg2[%20, %c0_21] : memref<32x128xf32, #tpu.memory_space<vmem>>, vector<1x128xf32>
    %c16 = arith.constant 16 : index
    %c0_22 = arith.constant 0 : index
    %22 = vector.load %arg7[%c16, %c0_22] : memref<64x128xf32, #tpu.memory_space<vmem>>, vector<1x128xf32>
    tpu.vector_store %arg7[%c16, %c0_22], %21 {strides = array<i32>} : memref<64x128xf32, #tpu.memory_space<vmem>>, vector<1x128xf32>,
    %c1_23 = arith.constant 1 : index
    %c2_24 = arith.constant 2 : index
    %23 = memref.load %arg1[%c1_23, %c2_24] : memref<2x8xi32, #tpu.memory_space<smem>>
    %24 = arith.index_cast %23 : i32 to index
    %c0_25 = arith.constant 0 : index
    %25 = vector.load %arg2[%24, %c0_25] : memref<32x128xf32, #tpu.memory_space<vmem>>, vector<1x128xf32>
    %c17 = arith.constant 17 : index
    %c0_26 = arith.constant 0 : index
    %26 = vector.load %arg7[%c17, %c0_26] : memref<64x128xf32, #tpu.memory_space<vmem>>, vector<1x128xf32>
    tpu.vector_store %arg7[%c17, %c0_26], %25 {strides = array<i32>} : memref<64x128xf32, #tpu.memory_space<vmem>>, vector<1x128xf32>,
    %c0_27 = arith.constant 0 : index
    %c3 = arith.constant 3 : index
    %27 = memref.load %arg1[%c0_27, %c3] : memref<2x8xi32, #tpu.memory_space<smem>>
    %28 = arith.index_cast %27 : i32 to index
    %c0_28 = arith.constant 0 : index
    %29 = vector.load %arg2[%28, %c0_28] : memref<32x128xf32, #tpu.memory_space<vmem>>, vector<1x128xf32>
    %c24 = arith.constant 24 : index
    %c0_29 = arith.constant 0 : index
    %30 = vector.load %arg7[%c24, %c0_29] : memref<64x128xf32, #tpu.memory_space<vmem>>, vector<1x128xf32>
    tpu.vector_store %arg7[%c24, %c0_29], %29 {strides = array<i32>} : memref<64x128xf32, #tpu.memory_space<vmem>>, vector<1x128xf32>,
    %c1_30 = arith.constant 1 : index
    %c3_31 = arith.constant 3 : index
    %31 = memref.load %arg1[%c1_30, %c3_31] : memref<2x8xi32, #tpu.memory_space<smem>>
    %32 = arith.index_cast %31 : i32 to index
    %c0_32 = arith.constant 0 : index
    %33 = vector.load %arg2[%32, %c0_32] : memref<32x128xf32, #tpu.memory_space<vmem>>, vector<1x128xf32>
    %c25 = arith.constant 25 : index
    %c0_33 = arith.constant 0 : index
    %34 = vector.load %arg7[%c25, %c0_33] : memref<64x128xf32, #tpu.memory_space<vmem>>, vector<1x128xf32>
    tpu.vector_store %arg7[%c25, %c0_33], %33 {strides = array<i32>} : memref<64x128xf32, #tpu.memory_space<vmem>>, vector<1x128xf32>,
    %c0_34 = arith.constant 0 : index
    %c4 = arith.constant 4 : index
    %35 = memref.load %arg1[%c0_34, %c4] : memref<2x8xi32, #tpu.memory_space<smem>>
    %36 = arith.index_cast %35 : i32 to index
    %c0_35 = arith.constant 0 : index
    %37 = vector.load %arg2[%36, %c0_35] : memref<32x128xf32, #tpu.memory_space<vmem>>, vector<1x128xf32>
    %c32 = arith.constant 32 : index
    %c0_36 = arith.constant 0 : index
    %38 = vector.load %arg7[%c32, %c0_36] : memref<64x128xf32, #tpu.memory_space<vmem>>, vector<1x128xf32>
    tpu.vector_store %arg7[%c32, %c0_36], %37 {strides = array<i32>} : memref<64x128xf32, #tpu.memory_space<vmem>>, vector<1x128xf32>,
    %c1_37 = arith.constant 1 : index
    %c4_38 = arith.constant 4 : index
    %39 = memref.load %arg1[%c1_37, %c4_38] : memref<2x8xi32, #tpu.memory_space<smem>>
    %40 = arith.index_cast %39 : i32 to index
    %c0_39 = arith.constant 0 : index
    %41 = vector.load %arg2[%40, %c0_39] : memref<32x128xf32, #tpu.memory_space<vmem>>, vector<1x128xf32>
    %c33 = arith.constant 33 : index
    %c0_40 = arith.constant 0 : index
    %42 = vector.load %arg7[%c33, %c0_40] : memref<64x128xf32, #tpu.memory_space<vmem>>, vector<1x128xf32>
    tpu.vector_store %arg7[%c33, %c0_40], %41 {strides = array<i32>} : memref<64x128xf32, #tpu.memory_space<vmem>>, vector<1x128xf32>,
    %c0_41 = arith.constant 0 : index
    %c5 = arith.constant 5 : index
    %43 = memref.load %arg1[%c0_41, %c5] : memref<2x8xi32, #tpu.memory_space<smem>>
    %44 = arith.index_cast %43 : i32 to index
    %c0_42 = arith.constant 0 : index
    %45 = vector.load %arg2[%44, %c0_42] : memref<32x128xf32, #tpu.memory_space<vmem>>, vector<1x128xf32>
    %c40 = arith.constant 40 : index
    %c0_43 = arith.constant 0 : index
    %46 = vector.load %arg7[%c40, %c0_43] : memref<64x128xf32, #tpu.memory_space<vmem>>, vector<1x128xf32>
    tpu.vector_store %arg7[%c40, %c0_43], %45 {strides = array<i32>} : memref<64x128xf32, #tpu.memory_space<vmem>>, vector<1x128xf32>,
    %c1_44 = arith.constant 1 : index
    %c5_45 = arith.constant 5 : index
    %47 = memref.load %arg1[%c1_44, %c5_45] : memref<2x8xi32, #tpu.memory_space<smem>>
    %48 = arith.index_cast %47 : i32 to index
    %c0_46 = arith.constant 0 : index
    %49 = vector.load %arg2[%48, %c0_46] : memref<32x128xf32, #tpu.memory_space<vmem>>, vector<1x128xf32>
    %c41 = arith.constant 41 : index
    %c0_47 = arith.constant 0 : index
    %50 = vector.load %arg7[%c41, %c0_47] : memref<64x128xf32, #tpu.memory_space<vmem>>, vector<1x128xf32>
    tpu.vector_store %arg7[%c41, %c0_47], %49 {strides = array<i32>} : memref<64x128xf32, #tpu.memory_space<vmem>>, vector<1x128xf32>,
    %c0_48 = arith.constant 0 : index
    %c6 = arith.constant 6 : index
    %51 = memref.load %arg1[%c0_48, %c6] : memref<2x8xi32, #tpu.memory_space<smem>>
    %52 = arith.index_cast %51 : i32 to index
    %c0_49 = arith.constant 0 : index
    %53 = vector.load %arg2[%52, %c0_49] : memref<32x128xf32, #tpu.memory_space<vmem>>, vector<1x128xf32>
    %c48 = arith.constant 48 : index
    %c0_50 = arith.constant 0 : index
    %54 = vector.load %arg7[%c48, %c0_50] : memref<64x128xf32, #tpu.memory_space<vmem>>, vector<1x128xf32>
    tpu.vector_store %arg7[%c48, %c0_50], %53 {strides = array<i32>} : memref<64x128xf32, #tpu.memory_space<vmem>>, vector<1x128xf32>,
    %c1_51 = arith.constant 1 : index
    %c6_52 = arith.constant 6 : index
    %55 = memref.load %arg1[%c1_51, %c6_52] : memref<2x8xi32, #tpu.memory_space<smem>>
    %56 = arith.index_cast %55 : i32 to index
    %c0_53 = arith.constant 0 : index
    %57 = vector.load %arg2[%56, %c0_53] : memref<32x128xf32, #tpu.memory_space<vmem>>, vector<1x128xf32>
    %c49 = arith.constant 49 : index
    %c0_54 = arith.constant 0 : index
    %58 = vector.load %arg7[%c49, %c0_54] : memref<64x128xf32, #tpu.memory_space<vmem>>, vector<1x128xf32>
    tpu.vector_store %arg7[%c49, %c0_54], %57 {strides = array<i32>} : memref<64x128xf32, #tpu.memory_space<vmem>>, vector<1x128xf32>,
    %c0_55 = arith.constant 0 : index
    %c7 = arith.constant 7 : index
    %59 = memref.load %arg1[%c0_55, %c7] : memref<2x8xi32, #tpu.memory_space<smem>>
    %60 = arith.index_cast %59 : i32 to index
    %c0_56 = arith.constant 0 : index
    %61 = vector.load %arg2[%60, %c0_56] : memref<32x128xf32, #tpu.memory_space<vmem>>, vector<1x128xf32>
    %c56 = arith.constant 56 : index
    %c0_57 = arith.constant 0 : index
    %62 = vector.load %arg7[%c56, %c0_57] : memref<64x128xf32, #tpu.memory_space<vmem>>, vector<1x128xf32>
    tpu.vector_store %arg7[%c56, %c0_57], %61 {strides = array<i32>} : memref<64x128xf32, #tpu.memory_space<vmem>>, vector<1x128xf32>,
    %c1_58 = arith.constant 1 : index
    %c7_59 = arith.constant 7 : index
    %63 = memref.load %arg1[%c1_58, %c7_59] : memref<2x8xi32, #tpu.memory_space<smem>>
    %64 = arith.index_cast %63 : i32 to index
    %c0_60 = arith.constant 0 : index
    %65 = vector.load %arg2[%64, %c0_60] : memref<32x128xf32, #tpu.memory_space<vmem>>, vector<1x128xf32>
    %c57 = arith.constant 57 : index
    %c0_61 = arith.constant 0 : index
    %66 = vector.load %arg7[%c57, %c0_61] : memref<64x128xf32, #tpu.memory_space<vmem>>, vector<1x128xf32>
    tpu.vector_store %arg7[%c57, %c0_61], %65 {strides = array<i32>} : memref<64x128xf32, #tpu.memory_space<vmem>>, vector<1x128xf32>,
    %cst_62 = arith.constant 0.000000e+00 : f32
    %67 = vector.broadcast %cst_62 : f32 to vector<8x32xf32>
    %cst_63 = arith.constant 0.000000e+00 : f32
    %68 = vector.broadcast %cst_63 : f32 to vector<8x32xf32>
    %c0_64 = arith.constant 0 : index
    %c0_65 = arith.constant 0 : index
    %69 = vector.load %arg7[%c0_64, %c0_65] : memref<64x128xf32, #tpu.memory_space<vmem>>, vector<8x128xf32>
    %cst_66 = arith.constant dense<0.000000e+00> : vector<8x128xf32>
    %70 = tpu.matmul %67, %0, %cst_66 {dimension_numbers = #tpu.dot_dimension_numbers<[1], [0], [0], [1], [0, 0, 1, 1], [], []>} : vector<8x32xf32>, vector<32x128xf32>, vector<8x128xf32> -> vector<8x128xf32>
    %71 = arith.addf %69, %70 : vector<8x128xf32>
    %72 = math.tanh %71 : vector<8x128xf32>
    %73 = vector.extract_strided_slice %72 {offsets = [0, 0], sizes = [8, 32], strides = [1, 1]} : vector<8x128xf32> to vector<8x32xf32>
    %cst_67 = arith.constant 5.000000e-01 : f32
    %74 = vector.broadcast %cst_67 : f32 to vector<8x32xf32>
    %75 = arith.mulf %74, %73 : vector<8x32xf32>
    %cst_68 = arith.constant 5.000000e-01 : f32
    %76 = vector.broadcast %cst_68 : f32 to vector<8x32xf32>
    %77 = arith.addf %75, %76 : vector<8x32xf32>
    %78 = vector.extract_strided_slice %72 {offsets = [0, 32], sizes = [8, 32], strides = [1, 1]} : vector<8x128xf32> to vector<8x32xf32>
    %cst_69 = arith.constant 5.000000e-01 : f32
    %79 = vector.broadcast %cst_69 : f32 to vector<8x32xf32>
    %80 = arith.mulf %79, %78 : vector<8x32xf32>
    %cst_70 = arith.constant 5.000000e-01 : f32
    %81 = vector.broadcast %cst_70 : f32 to vector<8x32xf32>
    %82 = arith.addf %80, %81 : vector<8x32xf32>
    %83 = vector.extract_strided_slice %72 {offsets = [0, 64], sizes = [8, 32], strides = [1, 1]} : vector<8x128xf32> to vector<8x32xf32>
    %84 = vector.extract_strided_slice %72 {offsets = [0, 96], sizes = [8, 32], strides = [1, 1]} : vector<8x128xf32> to vector<8x32xf32>
    %cst_71 = arith.constant 5.000000e-01 : f32
    %85 = vector.broadcast %cst_71 : f32 to vector<8x32xf32>
    %86 = arith.mulf %85, %84 : vector<8x32xf32>
    %cst_72 = arith.constant 5.000000e-01 : f32
    %87 = vector.broadcast %cst_72 : f32 to vector<8x32xf32>
    %88 = arith.addf %86, %87 : vector<8x32xf32>
    %89 = arith.mulf %82, %68 : vector<8x32xf32>
    %90 = arith.mulf %77, %83 : vector<8x32xf32>
    %91 = arith.addf %89, %90 : vector<8x32xf32>
    %92 = math.tanh %91 : vector<8x32xf32>
    %93 = arith.mulf %88, %92 : vector<8x32xf32>
    %c0_73 = arith.constant 0 : index
    %c0_74 = arith.constant 0 : index
    %94 = vector.load %arg8[%c0_73, %c0_74] : memref<64x32xf32, #tpu.memory_space<vmem>>, vector<8x32xf32>
    tpu.vector_store %arg8[%c0_73, %c0_74], %93 {strides = array<i32>} : memref<64x32xf32, #tpu.memory_space<vmem>>, vector<8x32xf32>,
    %c8_75 = arith.constant 8 : index
    %c0_76 = arith.constant 0 : index
    %95 = vector.load %arg7[%c8_75, %c0_76] : memref<64x128xf32, #tpu.memory_space<vmem>>, vector<8x128xf32>
    %cst_77 = arith.constant dense<0.000000e+00> : vector<8x128xf32>
    %96 = tpu.matmul %93, %0, %cst_77 {dimension_numbers = #tpu.dot_dimension_numbers<[1], [0], [0], [1], [0, 0, 1, 1], [], []>} : vector<8x32xf32>, vector<32x128xf32>, vector<8x128xf32> -> vector<8x128xf32>
    %97 = arith.addf %95, %96 : vector<8x128xf32>
    %98 = math.tanh %97 : vector<8x128xf32>
    %99 = vector.extract_strided_slice %98 {offsets = [0, 0], sizes = [8, 32], strides = [1, 1]} : vector<8x128xf32> to vector<8x32xf32>
    %cst_78 = arith.constant 5.000000e-01 : f32
    %100 = vector.broadcast %cst_78 : f32 to vector<8x32xf32>
    %101 = arith.mulf %100, %99 : vector<8x32xf32>
    %cst_79 = arith.constant 5.000000e-01 : f32
    %102 = vector.broadcast %cst_79 : f32 to vector<8x32xf32>
    %103 = arith.addf %101, %102 : vector<8x32xf32>
    %104 = vector.extract_strided_slice %98 {offsets = [0, 32], sizes = [8, 32], strides = [1, 1]} : vector<8x128xf32> to vector<8x32xf32>
    %cst_80 = arith.constant 5.000000e-01 : f32
    %105 = vector.broadcast %cst_80 : f32 to vector<8x32xf32>
    %106 = arith.mulf %105, %104 : vector<8x32xf32>
    %cst_81 = arith.constant 5.000000e-01 : f32
    %107 = vector.broadcast %cst_81 : f32 to vector<8x32xf32>
    %108 = arith.addf %106, %107 : vector<8x32xf32>
    %109 = vector.extract_strided_slice %98 {offsets = [0, 64], sizes = [8, 32], strides = [1, 1]} : vector<8x128xf32> to vector<8x32xf32>
    %110 = vector.extract_strided_slice %98 {offsets = [0, 96], sizes = [8, 32], strides = [1, 1]} : vector<8x128xf32> to vector<8x32xf32>
    %cst_82 = arith.constant 5.000000e-01 : f32
    %111 = vector.broadcast %cst_82 : f32 to vector<8x32xf32>
    %112 = arith.mulf %111, %110 : vector<8x32xf32>
    %cst_83 = arith.constant 5.000000e-01 : f32
    %113 = vector.broadcast %cst_83 : f32 to vector<8x32xf32>
    %114 = arith.addf %112, %113 : vector<8x32xf32>
    %115 = arith.mulf %108, %91 : vector<8x32xf32>
    %116 = arith.mulf %103, %109 : vector<8x32xf32>
    %117 = arith.addf %115, %116 : vector<8x32xf32>
    %118 = math.tanh %117 : vector<8x32xf32>
    %119 = arith.mulf %114, %118 : vector<8x32xf32>
    %c8_84 = arith.constant 8 : index
    %c0_85 = arith.constant 0 : index
    %120 = vector.load %arg8[%c8_84, %c0_85] : memref<64x32xf32, #tpu.memory_space<vmem>>, vector<8x32xf32>
    tpu.vector_store %arg8[%c8_84, %c0_85], %119 {strides = array<i32>} : memref<64x32xf32, #tpu.memory_space<vmem>>, vector<8x32xf32>,
    %c16_86 = arith.constant 16 : index
    %c0_87 = arith.constant 0 : index
    %121 = vector.load %arg7[%c16_86, %c0_87] : memref<64x128xf32, #tpu.memory_space<vmem>>, vector<8x128xf32>
    %cst_88 = arith.constant dense<0.000000e+00> : vector<8x128xf32>
    %122 = tpu.matmul %119, %0, %cst_88 {dimension_numbers = #tpu.dot_dimension_numbers<[1], [0], [0], [1], [0, 0, 1, 1], [], []>} : vector<8x32xf32>, vector<32x128xf32>, vector<8x128xf32> -> vector<8x128xf32>
    %123 = arith.addf %121, %122 : vector<8x128xf32>
    %124 = math.tanh %123 : vector<8x128xf32>
    %125 = vector.extract_strided_slice %124 {offsets = [0, 0], sizes = [8, 32], strides = [1, 1]} : vector<8x128xf32> to vector<8x32xf32>
    %cst_89 = arith.constant 5.000000e-01 : f32
    %126 = vector.broadcast %cst_89 : f32 to vector<8x32xf32>
    %127 = arith.mulf %126, %125 : vector<8x32xf32>
    %cst_90 = arith.constant 5.000000e-01 : f32
    %128 = vector.broadcast %cst_90 : f32 to vector<8x32xf32>
    %129 = arith.addf %127, %128 : vector<8x32xf32>
    %130 = vector.extract_strided_slice %124 {offsets = [0, 32], sizes = [8, 32], strides = [1, 1]} : vector<8x128xf32> to vector<8x32xf32>
    %cst_91 = arith.constant 5.000000e-01 : f32
    %131 = vector.broadcast %cst_91 : f32 to vector<8x32xf32>
    %132 = arith.mulf %131, %130 : vector<8x32xf32>
    %cst_92 = arith.constant 5.000000e-01 : f32
    %133 = vector.broadcast %cst_92 : f32 to vector<8x32xf32>
    %134 = arith.addf %132, %133 : vector<8x32xf32>
    %135 = vector.extract_strided_slice %124 {offsets = [0, 64], sizes = [8, 32], strides = [1, 1]} : vector<8x128xf32> to vector<8x32xf32>
    %136 = vector.extract_strided_slice %124 {offsets = [0, 96], sizes = [8, 32], strides = [1, 1]} : vector<8x128xf32> to vector<8x32xf32>
    %cst_93 = arith.constant 5.000000e-01 : f32
    %137 = vector.broadcast %cst_93 : f32 to vector<8x32xf32>
    %138 = arith.mulf %137, %136 : vector<8x32xf32>
    %cst_94 = arith.constant 5.000000e-01 : f32
    %139 = vector.broadcast %cst_94 : f32 to vector<8x32xf32>
    %140 = arith.addf %138, %139 : vector<8x32xf32>
    %141 = arith.mulf %134, %117 : vector<8x32xf32>
    %142 = arith.mulf %129, %135 : vector<8x32xf32>
    %143 = arith.addf %141, %142 : vector<8x32xf32>
    %144 = math.tanh %143 : vector<8x32xf32>
    %145 = arith.mulf %140, %144 : vector<8x32xf32>
    %c16_95 = arith.constant 16 : index
    %c0_96 = arith.constant 0 : index
    %146 = vector.load %arg8[%c16_95, %c0_96] : memref<64x32xf32, #tpu.memory_space<vmem>>, vector<8x32xf32>
    tpu.vector_store %arg8[%c16_95, %c0_96], %145 {strides = array<i32>} : memref<64x32xf32, #tpu.memory_space<vmem>>, vector<8x32xf32>,
    %c24_97 = arith.constant 24 : index
    %c0_98 = arith.constant 0 : index
    %147 = vector.load %arg7[%c24_97, %c0_98] : memref<64x128xf32, #tpu.memory_space<vmem>>, vector<8x128xf32>
    %cst_99 = arith.constant dense<0.000000e+00> : vector<8x128xf32>
    %148 = tpu.matmul %145, %0, %cst_99 {dimension_numbers = #tpu.dot_dimension_numbers<[1], [0], [0], [1], [0, 0, 1, 1], [], []>} : vector<8x32xf32>, vector<32x128xf32>, vector<8x128xf32> -> vector<8x128xf32>
    %149 = arith.addf %147, %148 : vector<8x128xf32>
    %150 = math.tanh %149 : vector<8x128xf32>
    %151 = vector.extract_strided_slice %150 {offsets = [0, 0], sizes = [8, 32], strides = [1, 1]} : vector<8x128xf32> to vector<8x32xf32>
    %cst_100 = arith.constant 5.000000e-01 : f32
    %152 = vector.broadcast %cst_100 : f32 to vector<8x32xf32>
    %153 = arith.mulf %152, %151 : vector<8x32xf32>
    %cst_101 = arith.constant 5.000000e-01 : f32
    %154 = vector.broadcast %cst_101 : f32 to vector<8x32xf32>
    %155 = arith.addf %153, %154 : vector<8x32xf32>
    %156 = vector.extract_strided_slice %150 {offsets = [0, 32], sizes = [8, 32], strides = [1, 1]} : vector<8x128xf32> to vector<8x32xf32>
    %cst_102 = arith.constant 5.000000e-01 : f32
    %157 = vector.broadcast %cst_102 : f32 to vector<8x32xf32>
    %158 = arith.mulf %157, %156 : vector<8x32xf32>
    %cst_103 = arith.constant 5.000000e-01 : f32
    %159 = vector.broadcast %cst_103 : f32 to vector<8x32xf32>
    %160 = arith.addf %158, %159 : vector<8x32xf32>
    %161 = vector.extract_strided_slice %150 {offsets = [0, 64], sizes = [8, 32], strides = [1, 1]} : vector<8x128xf32> to vector<8x32xf32>
    %162 = vector.extract_strided_slice %150 {offsets = [0, 96], sizes = [8, 32], strides = [1, 1]} : vector<8x128xf32> to vector<8x32xf32>
    %cst_104 = arith.constant 5.000000e-01 : f32
    %163 = vector.broadcast %cst_104 : f32 to vector<8x32xf32>
    %164 = arith.mulf %163, %162 : vector<8x32xf32>
    %cst_105 = arith.constant 5.000000e-01 : f32
    %165 = vector.broadcast %cst_105 : f32 to vector<8x32xf32>
    %166 = arith.addf %164, %165 : vector<8x32xf32>
    %167 = arith.mulf %160, %143 : vector<8x32xf32>
    %168 = arith.mulf %155, %161 : vector<8x32xf32>
    %169 = arith.addf %167, %168 : vector<8x32xf32>
    %170 = math.tanh %169 : vector<8x32xf32>
    %171 = arith.mulf %166, %170 : vector<8x32xf32>
    %c24_106 = arith.constant 24 : index
    %c0_107 = arith.constant 0 : index
    %172 = vector.load %arg8[%c24_106, %c0_107] : memref<64x32xf32, #tpu.memory_space<vmem>>, vector<8x32xf32>
    tpu.vector_store %arg8[%c24_106, %c0_107], %171 {strides = array<i32>} : memref<64x32xf32, #tpu.memory_space<vmem>>, vector<8x32xf32>,
    %c32_108 = arith.constant 32 : index
    %c0_109 = arith.constant 0 : index
    %173 = vector.load %arg7[%c32_108, %c0_109] : memref<64x128xf32, #tpu.memory_space<vmem>>, vector<8x128xf32>
    %cst_110 = arith.constant dense<0.000000e+00> : vector<8x128xf32>
    %174 = tpu.matmul %171, %0, %cst_110 {dimension_numbers = #tpu.dot_dimension_numbers<[1], [0], [0], [1], [0, 0, 1, 1], [], []>} : vector<8x32xf32>, vector<32x128xf32>, vector<8x128xf32> -> vector<8x128xf32>
    %175 = arith.addf %173, %174 : vector<8x128xf32>
    %176 = math.tanh %175 : vector<8x128xf32>
    %177 = vector.extract_strided_slice %176 {offsets = [0, 0], sizes = [8, 32], strides = [1, 1]} : vector<8x128xf32> to vector<8x32xf32>
    %cst_111 = arith.constant 5.000000e-01 : f32
    %178 = vector.broadcast %cst_111 : f32 to vector<8x32xf32>
    %179 = arith.mulf %178, %177 : vector<8x32xf32>
    %cst_112 = arith.constant 5.000000e-01 : f32
    %180 = vector.broadcast %cst_112 : f32 to vector<8x32xf32>
    %181 = arith.addf %179, %180 : vector<8x32xf32>
    %182 = vector.extract_strided_slice %176 {offsets = [0, 32], sizes = [8, 32], strides = [1, 1]} : vector<8x128xf32> to vector<8x32xf32>
    %cst_113 = arith.constant 5.000000e-01 : f32
    %183 = vector.broadcast %cst_113 : f32 to vector<8x32xf32>
    %184 = arith.mulf %183, %182 : vector<8x32xf32>
    %cst_114 = arith.constant 5.000000e-01 : f32
    %185 = vector.broadcast %cst_114 : f32 to vector<8x32xf32>
    %186 = arith.addf %184, %185 : vector<8x32xf32>
    %187 = vector.extract_strided_slice %176 {offsets = [0, 64], sizes = [8, 32], strides = [1, 1]} : vector<8x128xf32> to vector<8x32xf32>
    %188 = vector.extract_strided_slice %176 {offsets = [0, 96], sizes = [8, 32], strides = [1, 1]} : vector<8x128xf32> to vector<8x32xf32>
    %cst_115 = arith.constant 5.000000e-01 : f32
    %189 = vector.broadcast %cst_115 : f32 to vector<8x32xf32>
    %190 = arith.mulf %189, %188 : vector<8x32xf32>
    %cst_116 = arith.constant 5.000000e-01 : f32
    %191 = vector.broadcast %cst_116 : f32 to vector<8x32xf32>
    %192 = arith.addf %190, %191 : vector<8x32xf32>
    %193 = arith.mulf %186, %169 : vector<8x32xf32>
    %194 = arith.mulf %181, %187 : vector<8x32xf32>
    %195 = arith.addf %193, %194 : vector<8x32xf32>
    %196 = math.tanh %195 : vector<8x32xf32>
    %197 = arith.mulf %192, %196 : vector<8x32xf32>
    %c32_117 = arith.constant 32 : index
    %c0_118 = arith.constant 0 : index
    %198 = vector.load %arg8[%c32_117, %c0_118] : memref<64x32xf32, #tpu.memory_space<vmem>>, vector<8x32xf32>
    tpu.vector_store %arg8[%c32_117, %c0_118], %197 {strides = array<i32>} : memref<64x32xf32, #tpu.memory_space<vmem>>, vector<8x32xf32>,
    %c40_119 = arith.constant 40 : index
    %c0_120 = arith.constant 0 : index
    %199 = vector.load %arg7[%c40_119, %c0_120] : memref<64x128xf32, #tpu.memory_space<vmem>>, vector<8x128xf32>
    %cst_121 = arith.constant dense<0.000000e+00> : vector<8x128xf32>
    %200 = tpu.matmul %197, %0, %cst_121 {dimension_numbers = #tpu.dot_dimension_numbers<[1], [0], [0], [1], [0, 0, 1, 1], [], []>} : vector<8x32xf32>, vector<32x128xf32>, vector<8x128xf32> -> vector<8x128xf32>
    %201 = arith.addf %199, %200 : vector<8x128xf32>
    %202 = math.tanh %201 : vector<8x128xf32>
    %203 = vector.extract_strided_slice %202 {offsets = [0, 0], sizes = [8, 32], strides = [1, 1]} : vector<8x128xf32> to vector<8x32xf32>
    %cst_122 = arith.constant 5.000000e-01 : f32
    %204 = vector.broadcast %cst_122 : f32 to vector<8x32xf32>
    %205 = arith.mulf %204, %203 : vector<8x32xf32>
    %cst_123 = arith.constant 5.000000e-01 : f32
    %206 = vector.broadcast %cst_123 : f32 to vector<8x32xf32>
    %207 = arith.addf %205, %206 : vector<8x32xf32>
    %208 = vector.extract_strided_slice %202 {offsets = [0, 32], sizes = [8, 32], strides = [1, 1]} : vector<8x128xf32> to vector<8x32xf32>
    %cst_124 = arith.constant 5.000000e-01 : f32
    %209 = vector.broadcast %cst_124 : f32 to vector<8x32xf32>
    %210 = arith.mulf %209, %208 : vector<8x32xf32>
    %cst_125 = arith.constant 5.000000e-01 : f32
    %211 = vector.broadcast %cst_125 : f32 to vector<8x32xf32>
    %212 = arith.addf %210, %211 : vector<8x32xf32>
    %213 = vector.extract_strided_slice %202 {offsets = [0, 64], sizes = [8, 32], strides = [1, 1]} : vector<8x128xf32> to vector<8x32xf32>
    %214 = vector.extract_strided_slice %202 {offsets = [0, 96], sizes = [8, 32], strides = [1, 1]} : vector<8x128xf32> to vector<8x32xf32>
    %cst_126 = arith.constant 5.000000e-01 : f32
    %215 = vector.broadcast %cst_126 : f32 to vector<8x32xf32>
    %216 = arith.mulf %215, %214 : vector<8x32xf32>
    %cst_127 = arith.constant 5.000000e-01 : f32
    %217 = vector.broadcast %cst_127 : f32 to vector<8x32xf32>
    %218 = arith.addf %216, %217 : vector<8x32xf32>
    %219 = arith.mulf %212, %195 : vector<8x32xf32>
    %220 = arith.mulf %207, %213 : vector<8x32xf32>
    %221 = arith.addf %219, %220 : vector<8x32xf32>
    %222 = math.tanh %221 : vector<8x32xf32>
    %223 = arith.mulf %218, %222 : vector<8x32xf32>
    %c40_128 = arith.constant 40 : index
    %c0_129 = arith.constant 0 : index
    %224 = vector.load %arg8[%c40_128, %c0_129] : memref<64x32xf32, #tpu.memory_space<vmem>>, vector<8x32xf32>
    tpu.vector_store %arg8[%c40_128, %c0_129], %223 {strides = array<i32>} : memref<64x32xf32, #tpu.memory_space<vmem>>, vector<8x32xf32>,
    %c48_130 = arith.constant 48 : index
    %c0_131 = arith.constant 0 : index
    %225 = vector.load %arg7[%c48_130, %c0_131] : memref<64x128xf32, #tpu.memory_space<vmem>>, vector<8x128xf32>
    %cst_132 = arith.constant dense<0.000000e+00> : vector<8x128xf32>
    %226 = tpu.matmul %223, %0, %cst_132 {dimension_numbers = #tpu.dot_dimension_numbers<[1], [0], [0], [1], [0, 0, 1, 1], [], []>} : vector<8x32xf32>, vector<32x128xf32>, vector<8x128xf32> -> vector<8x128xf32>
    %227 = arith.addf %225, %226 : vector<8x128xf32>
    %228 = math.tanh %227 : vector<8x128xf32>
    %229 = vector.extract_strided_slice %228 {offsets = [0, 0], sizes = [8, 32], strides = [1, 1]} : vector<8x128xf32> to vector<8x32xf32>
    %cst_133 = arith.constant 5.000000e-01 : f32
    %230 = vector.broadcast %cst_133 : f32 to vector<8x32xf32>
    %231 = arith.mulf %230, %229 : vector<8x32xf32>
    %cst_134 = arith.constant 5.000000e-01 : f32
    %232 = vector.broadcast %cst_134 : f32 to vector<8x32xf32>
    %233 = arith.addf %231, %232 : vector<8x32xf32>
    %234 = vector.extract_strided_slice %228 {offsets = [0, 32], sizes = [8, 32], strides = [1, 1]} : vector<8x128xf32> to vector<8x32xf32>
    %cst_135 = arith.constant 5.000000e-01 : f32
    %235 = vector.broadcast %cst_135 : f32 to vector<8x32xf32>
    %236 = arith.mulf %235, %234 : vector<8x32xf32>
    %cst_136 = arith.constant 5.000000e-01 : f32
    %237 = vector.broadcast %cst_136 : f32 to vector<8x32xf32>
    %238 = arith.addf %236, %237 : vector<8x32xf32>
    %239 = vector.extract_strided_slice %228 {offsets = [0, 64], sizes = [8, 32], strides = [1, 1]} : vector<8x128xf32> to vector<8x32xf32>
    %240 = vector.extract_strided_slice %228 {offsets = [0, 96], sizes = [8, 32], strides = [1, 1]} : vector<8x128xf32> to vector<8x32xf32>
    %cst_137 = arith.constant 5.000000e-01 : f32
    %241 = vector.broadcast %cst_137 : f32 to vector<8x32xf32>
    %242 = arith.mulf %241, %240 : vector<8x32xf32>
    %cst_138 = arith.constant 5.000000e-01 : f32
    %243 = vector.broadcast %cst_138 : f32 to vector<8x32xf32>
    %244 = arith.addf %242, %243 : vector<8x32xf32>
    %245 = arith.mulf %238, %221 : vector<8x32xf32>
    %246 = arith.mulf %233, %239 : vector<8x32xf32>
    %247 = arith.addf %245, %246 : vector<8x32xf32>
    %248 = math.tanh %247 : vector<8x32xf32>
    %249 = arith.mulf %244, %248 : vector<8x32xf32>
    %c48_139 = arith.constant 48 : index
    %c0_140 = arith.constant 0 : index
    %250 = vector.load %arg8[%c48_139, %c0_140] : memref<64x32xf32, #tpu.memory_space<vmem>>, vector<8x32xf32>
    tpu.vector_store %arg8[%c48_139, %c0_140], %249 {strides = array<i32>} : memref<64x32xf32, #tpu.memory_space<vmem>>, vector<8x32xf32>,
    %c56_141 = arith.constant 56 : index
    %c0_142 = arith.constant 0 : index
    %251 = vector.load %arg7[%c56_141, %c0_142] : memref<64x128xf32, #tpu.memory_space<vmem>>, vector<8x128xf32>
    %cst_143 = arith.constant dense<0.000000e+00> : vector<8x128xf32>
    %252 = tpu.matmul %249, %0, %cst_143 {dimension_numbers = #tpu.dot_dimension_numbers<[1], [0], [0], [1], [0, 0, 1, 1], [], []>} : vector<8x32xf32>, vector<32x128xf32>, vector<8x128xf32> -> vector<8x128xf32>
    %253 = arith.addf %251, %252 : vector<8x128xf32>
    %254 = math.tanh %253 : vector<8x128xf32>
    %255 = vector.extract_strided_slice %254 {offsets = [0, 0], sizes = [8, 32], strides = [1, 1]} : vector<8x128xf32> to vector<8x32xf32>
    %cst_144 = arith.constant 5.000000e-01 : f32
    %256 = vector.broadcast %cst_144 : f32 to vector<8x32xf32>
    %257 = arith.mulf %256, %255 : vector<8x32xf32>
    %cst_145 = arith.constant 5.000000e-01 : f32
    %258 = vector.broadcast %cst_145 : f32 to vector<8x32xf32>
    %259 = arith.addf %257, %258 : vector<8x32xf32>
    %260 = vector.extract_strided_slice %254 {offsets = [0, 32], sizes = [8, 32], strides = [1, 1]} : vector<8x128xf32> to vector<8x32xf32>
    %cst_146 = arith.constant 5.000000e-01 : f32
    %261 = vector.broadcast %cst_146 : f32 to vector<8x32xf32>
    %262 = arith.mulf %261, %260 : vector<8x32xf32>
    %cst_147 = arith.constant 5.000000e-01 : f32
    %263 = vector.broadcast %cst_147 : f32 to vector<8x32xf32>
    %264 = arith.addf %262, %263 : vector<8x32xf32>
    %265 = vector.extract_strided_slice %254 {offsets = [0, 64], sizes = [8, 32], strides = [1, 1]} : vector<8x128xf32> to vector<8x32xf32>
    %266 = vector.extract_strided_slice %254 {offsets = [0, 96], sizes = [8, 32], strides = [1, 1]} : vector<8x128xf32> to vector<8x32xf32>
    %cst_148 = arith.constant 5.000000e-01 : f32
    %267 = vector.broadcast %cst_148 : f32 to vector<8x32xf32>
    %268 = arith.mulf %267, %266 : vector<8x32xf32>
    %cst_149 = arith.constant 5.000000e-01 : f32
    %269 = vector.broadcast %cst_149 : f32 to vector<8x32xf32>
    %270 = arith.addf %268, %269 : vector<8x32xf32>
    %271 = arith.mulf %264, %247 : vector<8x32xf32>
    %272 = arith.mulf %259, %265 : vector<8x32xf32>
    %273 = arith.addf %271, %272 : vector<8x32xf32>
    %274 = math.tanh %273 : vector<8x32xf32>
    %275 = arith.mulf %270, %274 : vector<8x32xf32>
    %c56_150 = arith.constant 56 : index
    %c0_151 = arith.constant 0 : index
    %276 = vector.load %arg8[%c56_150, %c0_151] : memref<64x32xf32, #tpu.memory_space<vmem>>, vector<8x32xf32>
    tpu.vector_store %arg8[%c56_150, %c0_151], %275 {strides = array<i32>} : memref<64x32xf32, #tpu.memory_space<vmem>>, vector<8x32xf32>,
    %c0_152 = arith.constant 0 : index
    %c0_153 = arith.constant 0 : index
    %277 = vector.load %arg8[%c0_152, %c0_153] : memref<64x32xf32, #tpu.memory_space<vmem>>, vector<1x32xf32>
    %c8_154 = arith.constant 8 : index
    %c0_155 = arith.constant 0 : index
    %278 = vector.load %arg8[%c8_154, %c0_155] : memref<64x32xf32, #tpu.memory_space<vmem>>, vector<1x32xf32>
    %c16_156 = arith.constant 16 : index
    %c0_157 = arith.constant 0 : index
    %279 = vector.load %arg8[%c16_156, %c0_157] : memref<64x32xf32, #tpu.memory_space<vmem>>, vector<1x32xf32>
    %c24_158 = arith.constant 24 : index
    %c0_159 = arith.constant 0 : index
    %280 = vector.load %arg8[%c24_158, %c0_159] : memref<64x32xf32, #tpu.memory_space<vmem>>, vector<1x32xf32>
    %c32_160 = arith.constant 32 : index
    %c0_161 = arith.constant 0 : index
    %281 = vector.load %arg8[%c32_160, %c0_161] : memref<64x32xf32, #tpu.memory_space<vmem>>, vector<1x32xf32>
    %c40_162 = arith.constant 40 : index
    %c0_163 = arith.constant 0 : index
    %282 = vector.load %arg8[%c40_162, %c0_163] : memref<64x32xf32, #tpu.memory_space<vmem>>, vector<1x32xf32>
    %c48_164 = arith.constant 48 : index
    %c0_165 = arith.constant 0 : index
    %283 = vector.load %arg8[%c48_164, %c0_165] : memref<64x32xf32, #tpu.memory_space<vmem>>, vector<1x32xf32>
    %c56_166 = arith.constant 56 : index
    %c0_167 = arith.constant 0 : index
    %284 = vector.load %arg8[%c56_166, %c0_167] : memref<64x32xf32, #tpu.memory_space<vmem>>, vector<1x32xf32>
    %c1_168 = arith.constant 1 : index
    %c0_169 = arith.constant 0 : index
    %285 = vector.load %arg8[%c1_168, %c0_169] : memref<64x32xf32, #tpu.memory_space<vmem>>, vector<1x32xf32>
    %c9_170 = arith.constant 9 : index
    %c0_171 = arith.constant 0 : index
    %286 = vector.load %arg8[%c9_170, %c0_171] : memref<64x32xf32, #tpu.memory_space<vmem>>, vector<1x32xf32>
    %c17_172 = arith.constant 17 : index
    %c0_173 = arith.constant 0 : index
    %287 = vector.load %arg8[%c17_172, %c0_173] : memref<64x32xf32, #tpu.memory_space<vmem>>, vector<1x32xf32>
    %c25_174 = arith.constant 25 : index
    %c0_175 = arith.constant 0 : index
    %288 = vector.load %arg8[%c25_174, %c0_175] : memref<64x32xf32, #tpu.memory_space<vmem>>, vector<1x32xf32>
    %c33_176 = arith.constant 33 : index
    %c0_177 = arith.constant 0 : index
    %289 = vector.load %arg8[%c33_176, %c0_177] : memref<64x32xf32, #tpu.memory_space<vmem>>, vector<1x32xf32>
    %c41_178 = arith.constant 41 : index
    %c0_179 = arith.constant 0 : index
    %290 = vector.load %arg8[%c41_178, %c0_179] : memref<64x32xf32, #tpu.memory_space<vmem>>, vector<1x32xf32>
    %c49_180 = arith.constant 49 : index
    %c0_181 = arith.constant 0 : index
    %291 = vector.load %arg8[%c49_180, %c0_181] : memref<64x32xf32, #tpu.memory_space<vmem>>, vector<1x32xf32>
    %c57_182 = arith.constant 57 : index
    %c0_183 = arith.constant 0 : index
    %292 = vector.load %arg8[%c57_182, %c0_183] : memref<64x32xf32, #tpu.memory_space<vmem>>, vector<1x32xf32>
    %293 = tpu.concatenate %277, %278, %279, %280, %281, %282, %283, %284, %285, %286, %287, %288, %289, %290, %291, %292 in 0 : vector<1x32xf32>, vector<1x32xf32>, vector<1x32xf32>, vector<1x32xf32>, vector<1x32xf32>, vector<1x32xf32>, vector<1x32xf32>, vector<1x32xf32>, vector<1x32xf32>, vector<1x32xf32>, vector<1x32xf32>, vector<1x32xf32>, vector<1x32xf32>, vector<1x32xf32>, vector<1x32xf32>, vector<1x32xf32> -> vector<16x32xf32>
    %c0_184 = arith.constant 0 : index
    %c0_185 = arith.constant 0 : index
    %294 = vector.load %arg4[%c0_184, %c0_185] : memref<32x8xf32, #tpu.memory_space<vmem>>, vector<32x8xf32>
    %cst_186 = arith.constant dense<0.000000e+00> : vector<16x8xf32>
    %295 = tpu.matmul %293, %294, %cst_186 {dimension_numbers = #tpu.dot_dimension_numbers<[1], [0], [0], [1], [0, 0, 1, 1], [], []>} : vector<16x32xf32>, vector<32x8xf32>, vector<16x8xf32> -> vector<16x8xf32>
    %c0_187 = arith.constant 0 : index
    %c0_188 = arith.constant 0 : index
    %296 = vector.load %arg5[%c0_187, %c0_188] : memref<1x8xf32, #tpu.memory_space<vmem>>, vector<1x8xf32>
    %297 = vector.broadcast %296 : vector<1x8xf32> to vector<16x8xf32>
    %298 = arith.addf %295, %297 : vector<16x8xf32>
    %cst_189 = arith.constant dense<0xFF800000> : vector<16xf32>
    %299 = vector.multi_reduction <maximumf>, %298, %cst_189 [1] : vector<16x8xf32> to vector<16xf32>
    %300 = vector.shape_cast %299 : vector<16xf32> to vector<16x1xf32>
    %301 = vector.broadcast %300 : vector<16x1xf32> to vector<16x8xf32>
    %302 = arith.subf %298, %301 : vector<16x8xf32>
    %303 = math.exp %302 : vector<16x8xf32>
    %cst_190 = arith.constant dense<0.000000e+00> : vector<16xf32>
    %304 = vector.multi_reduction <add>, %303, %cst_190 [1] : vector<16x8xf32> to vector<16xf32>
    %305 = vector.shape_cast %304 : vector<16xf32> to vector<16x1xf32>
    %306 = math.log %305 : vector<16x1xf32>
    %307 = vector.broadcast %306 : vector<16x1xf32> to vector<16x8xf32>
    %308 = arith.subf %302, %307 : vector<16x8xf32>
    %c0_191 = arith.constant 0 : index
    %c0_192 = arith.constant 0 : index
    %309 = vector.load %arg6[%c0_191, %c0_192] : memref<16x8xf32, #tpu.memory_space<vmem>>, vector<16x8xf32>
    tpu.vector_store %arg6[%c0_191, %c0_192], %308 {strides = array<i32>} : memref<16x8xf32, #tpu.memory_space<vmem>>, vector<16x8xf32>,
    return
  }
  func.func @transform_0(%arg0: i32, %arg1: memref<2x8xi32, #tpu.memory_space<smem>>) -> (i32, i32) {
    %c0_i32 = arith.constant 0 : i32
    %c0_i32_0 = arith.constant 0 : i32
    %c0_i32_1 = arith.constant 0 : i32
    return %c0_i32, %c0_i32_0 : i32, i32
  }
  func.func @transform_1(%arg0: i32, %arg1: memref<2x8xi32, #tpu.memory_space<smem>>) -> (i32, i32) {
    %c0_i32 = arith.constant 0 : i32
    %c0_i32_0 = arith.constant 0 : i32
    %c0_i32_1 = arith.constant 0 : i32
    return %c0_i32, %c0_i32_0 : i32, i32
  }
  func.func @transform_2(%arg0: i32, %arg1: memref<2x8xi32, #tpu.memory_space<smem>>) -> (i32, i32) {
    %c0_i32 = arith.constant 0 : i32
    %c0_i32_0 = arith.constant 0 : i32
    %c0_i32_1 = arith.constant 0 : i32
    return %c0_i32, %c0_i32_0 : i32, i32
  }
  func.func @transform_3(%arg0: i32, %arg1: memref<2x8xi32, #tpu.memory_space<smem>>) -> (i32, i32) {
    %c0_i32 = arith.constant 0 : i32
    %c0_i32_0 = arith.constant 0 : i32
    %c0_i32_1 = arith.constant 0 : i32
    return %c0_i32, %c0_i32_0 : i32, i32
  }
  func.func @transform_4(%arg0: i32, %arg1: memref<2x8xi32, #tpu.memory_space<smem>>) -> (i32, i32) {
    %c0_i32 = arith.constant 0 : i32
    %c0_i32_0 = arith.constant 0 : i32
    %c0_i32_1 = arith.constant 0 : i32
    return %c0_i32, %c0_i32_0 : i32, i32
  }
}

</mosaic_0001>

<bundles_post_ra>
// kernel: net_forward.1
= control target key start
LH: loop header
LB: loop body
LE: loop exit
PB: predicated region body
PF: predicated region fallthrough
CT: control target
= control target key end

     0   :  { %s1616_s0 = inlined_call_operand.vmem [shape: s32[2,8], index: 0, kind: input, shape index: {}]   ;;  %s1617_s1 = inlined_call_operand.vmem [shape: f32[32,128], index: 1, kind: input, shape index: {}]   ;;  %s1618_s2 = inlined_call_operand.vmem [shape: f32[32,128], index: 2, kind: input, shape index: {}]   ;;  %s1619_s3 = inlined_call_operand.vmem [shape: f32[32,8], index: 3, kind: input, shape index: {}]   ;;  %s1620_s4 = inlined_call_operand.vmem [shape: f32[1,8], index: 4, kind: input, shape index: {}]   ;;  %s1621_s5 = inlined_call_operand.vmem [shape: f32[16,8], index: 5, kind: output, shape index: {}]  }
   0x1   :  { %s10_s20 = sshll.u32 %s1616_s0, 4  ;;  %s11_s20 = int_to_ptr.vmem [resolvable:$true] %s10_s20 }
   0x2   :  { %s1327_s21 = scalar_lea.vmem %s11_s20, 32  ;;  %p1332_p1 = scmp.lt.s32.totalorder %s11_s20, %s11_s20 }
   0x3   :  { %p1328_p0 = scmp.ne.s32.totalorder %s11_s20, %s1327_s21  ;;  %p1333_p2 = scmp.lt.s32.totalorder %s1327_s21, %s1327_s21 }
   0x5   :  { %p1334_p3 = por %p1333_p2, %p1332_p1 }
   0x7   :  { %p1335_p4 = pnand %p1334_p3, %p1328_p0 }
   0x9   :  { %1338 = shalt.err (!%p1335_p4)  }
   0xa   :  { %s1341_s22 = smov [#allocation5]  }
   0xb   :  { %13 = dma.vmem_to_smem %s11_s20, 32, %s1341_s22, [#allocation4] }
   0xc   :  { %1339 = dma.done.wait [#allocation4], 32 }
   0xd   :  { %1340 = vsyncadd [#allocation4], 4294967264 }
   0xe   :  { %15 = sfence }
   0xf   :  { %v1382_v0 = vld [vmem:[%s1618_s2 + $0x18] sm:$0xff]  ;;  %v1342_v1 = vmov 0.0   ;;  %v1396_v2 = vld [vmem:[%s1618_s2 + $0x10] sm:$0xff]  ;;  %vm1343_vm0 = vmmov 0   ;;  %s36_s26 = sld [smem:[#allocation5]]  ;;  %v1406_v3 = vld [vmem:[%s1618_s2 + $0x8] sm:$0xff] }
  0x10   :  { %1183 = vmatprep.subr.mxu0 %v1342_v1  ;;  %28 = vst [vmem:[#allocation2] sm:$0xff] %v1342_v1  ;;  %29 = vst [vmem:[#allocation2 + $0x8] sm:$0xff] %v1342_v1  ;;  %1191 = vmatprep.mubr.msk.f32.mxu0 %vm1343_vm0, %v1342_v1  ;;  %s1112_s27 = sld [smem:[#allocation5 + $0x80]]  ;;  %v1415_v4 = vld [vmem:[%s1618_s2] sm:$0xff]  ;;  %s1344_s12 = smov 64   ;;  %vm101_vm1 = vcmask 261120  }
  0x11   :  { %30 = vst [vmem:[#allocation2 + $0x10] sm:$0xff] %v1342_v1  ;;  %31 = vst [vmem:[#allocation2 + $0x18] sm:$0xff] %v1342_v1  ;;  %1184 = vmatpush3.msra.mxu0 %v1382_v0  ;;  %1194 = vmatprep.subr.mxu1 %v1342_v1  ;;  %s1345_s13 = smov 32   ;;  %s1113_s14 = sld [smem:[#allocation5 + $0x1]]  ;;  %vm952_vm2 = vcmask 1040384   ;;  %vm954_vm3 = vcmask 1041408  }
  0x12   :  { %32 = vst [vmem:[#allocation2 + $0x20] sm:$0xff] %v1342_v1  ;;  %33 = vst [vmem:[#allocation2 + $0x28] sm:$0xff] %v1342_v1  ;;  %1185 = vmatprep.subr.mxu0 %v1342_v1  ;;  %1195 = vmatpush3.msra.mxu1 %v1382_v0  ;;  %s1114_s15 = sld [smem:[#allocation5 + $0x81]]  ;;  %vm956_vm4 = vcmask 1042432   ;;  %vm958_vm5 = vcmask 1043456   ;;  %vm960_vm6 = vcmask 1044480  }
  0x13   :  { %34 = vst [vmem:[#allocation2 + $0x30] sm:$0xff] %v1342_v1  ;;  %35 = vst [vmem:[#allocation2 + $0x38] sm:$0xff] %v1342_v1  ;;  %1186 = vmatpush3.msra.mxu0 %v1396_v2  ;;  %1196 = vmatprep.subr.mxu1 %v1342_v1  ;;  %s1115_s22 = sld [smem:[#allocation5 + $0x2]]  ;;  %vm962_vm7 = vcmask 1045504   ;;  %vm964_vm8 = vcmask 1046528   ;;  %vm1065_vm9 = vcmask 64512  }
  0x14   :  { %1187 = vmatprep.subr.mxu0 %v1342_v1  ;;  %1197 = vmatpush3.msra.mxu1 %v1396_v2  ;;  %s1116_s23 = sld [smem:[#allocation5 + $0x82]] }
  0x15   :  { %1188 = vmatpush3.msra.mxu0 %v1406_v3  ;;  %1198 = vmatprep.subr.mxu1 %v1342_v1  ;;  %s37_s9 = scalar_lea.vmem %s1617_s1, %s36_s26  ;;  %s1117_s29 = sld [smem:[#allocation5 + $0x3]] }
  0x16   :  { %1189 = vmatprep.subr.mxu0 %v1342_v1  ;;  %1199 = vmatpush3.msra.mxu1 %v1406_v3  ;;  %v38_v5 = vld [vmem:[%s37_s9] sm:$0x1]  ;;  %s41_s11 = scalar_lea.vmem %s1617_s1, %s1112_s27  ;;  %s1118_s30 = sld [smem:[#allocation5 + $0x83]] }
  0x17   :  { %1190 = vmatpush3.msra.mxu0 %v1415_v4  ;;  %1200 = vmatprep.subr.mxu1 %v1342_v1  ;;  %39 = vst [vmem:[#allocation2] sm:$0x1] %v38_v5  ;;  %v42_v6 = vld [vmem:[%s41_s11] sm:$0x1]  ;;  %s45_s18 = scalar_lea.vmem %s1617_s1, %s1113_s14  ;;  %s1119_s11 = sld [smem:[#allocation5 + $0x4]] }
  0x18   :  { %1192 = vmatmul.mubr.f32.vlgmr.msra.gmra.mxu0 %v1342_v1  ;;  %1201 = vmatpush3.msra.mxu1 %v1415_v4  ;;  %43 = vst [vmem:[#allocation2 + $0x1] sm:$0x1] %v42_v6  ;;  %v46_v20 = vld [vmem:[%s45_s18] sm:$0x1]  ;;  %s49_s21 = scalar_lea.vmem %s1617_s1, %s1114_s15  ;;  %s1120_s14 = sld [smem:[#allocation5 + $0x84]] }
  0x19   :  { %1202 = vmatprep.mubr.msk.f32.mxu1 %vm1343_vm0, %v1342_v1  ;;  %1205 = vmatprep.subr.mxu0 %v1342_v1  ;;  %47 = vst [vmem:[#allocation2 + $0x8] sm:$0x1] %v46_v20  ;;  %v50_v21 = vld [vmem:[%s49_s21] sm:$0x1]  ;;  %s53_s25 = scalar_lea.vmem %s1617_s1, %s1115_s22  ;;  %s1121_s21 = sld [smem:[#allocation5 + $0x5]] }
  0x1a   :  { %1206 = vmatpush3.msra.mxu0 %v1382_v0  ;;  %1213 = vmatprep.mubr.msk.f32.mxu0 %vm1343_vm0, %v1342_v1  ;;  %51 = vst [vmem:[#allocation2 + $0x9] sm:$0x1] %v50_v21  ;;  %v54_v38 = vld [vmem:[%s53_s25] sm:$0x1]  ;;  %s57_s28 = scalar_lea.vmem %s1617_s1, %s1116_s23  ;;  %s1122_s22 = sld [smem:[#allocation5 + $0x85]] }
  0x1b   :  { %1207 = vmatprep.subr.mxu0 %v1342_v1  ;;  %1216 = vmatprep.subr.mxu1 %v1342_v1  ;;  %55 = vst [vmem:[#allocation2 + $0x10] sm:$0x1] %v54_v38  ;;  %v58_v39 = vld [vmem:[%s57_s28] sm:$0x1]  ;;  %s61_s8 = scalar_lea.vmem %s1617_s1, %s1117_s29  ;;  %s1123_s28 = sld [smem:[#allocation5 + $0x6]] }
  0x1c   :  { %1208 = vmatpush3.msra.mxu0 %v1396_v2  ;;  %59 = vst [vmem:[#allocation2 + $0x11] sm:$0x1] %v58_v39  ;;  %v62_v56 = vld [vmem:[%s61_s8] sm:$0x1]  ;;  %s65_s2 = scalar_lea.vmem %s1617_s1, %s1118_s30  ;;  %s1124_s29 = sld [smem:[#allocation5 + $0x86]] }
  0x1d   :  { %1209 = vmatprep.subr.mxu0 %v1342_v1  ;;  %63 = vst [vmem:[#allocation2 + $0x18] sm:$0x1] %v62_v56  ;;  %v66_v57 = vld [vmem:[%s65_s2] sm:$0x1]  ;;  %s69_s17 = scalar_lea.vmem %s1617_s1, %s1119_s11  ;;  %s1125_s2 = sld [smem:[#allocation5 + $0x7]] }
  0x1e   :  { %1210 = vmatpush3.msra.mxu0 %v1406_v3  ;;  %67 = vst [vmem:[#allocation2 + $0x19] sm:$0x1] %v66_v57  ;;  %s73_s20 = scalar_lea.vmem %s1617_s1, %s1120_s14  ;;  %s1126_s11 = sld [smem:[#allocation5 + $0x87]] }
  0x1f   :  { %1211 = vmatprep.subr.mxu0 %v1342_v1  ;;  %v100_v7 = vld [vmem:[#allocation2] sm:$0xff]  ;;  %s77_s0 = scalar_lea.vmem %s1617_s1, %s1121_s21 }
  0x20   :  { %1212 = vmatpush3.msra.mxu0 %v1415_v4  ;;  %s81_s27 = scalar_lea.vmem %s1617_s1, %s1122_s22 }
  0x21   :  { %1227 = vmatprep.subr.mxu0 %v1342_v1  ;;  %v201_v25 = vld [vmem:[#allocation2 + $0x8] sm:$0xff]  ;;  %s85_s7 = scalar_lea.vmem %s1617_s1, %s1123_s28 }
  0x22   :  { %s89_s10 = scalar_lea.vmem %s1617_s1, %s1124_s29 }
  0x23   :  { %v300_v43 = vld [vmem:[#allocation2 + $0x10] sm:$0xff]  ;;  %s93_s16 = scalar_lea.vmem %s1617_s1, %s1125_s2 }
  0x24   :  { %s97_s19 = scalar_lea.vmem %s1617_s1, %s1126_s11 }
  0x25   :  { %v399_v61 = vld [vmem:[#allocation2 + $0x18] sm:$0xff] }
  0xd8   :  { %v171_v8 = vpop.f32.mrf.mxu0 }
  0xd9   :  { %v175_v9 = vadd.f32 %v171_v8, %v100_v7 }
  0xda   :  { %v1193_v10 = vpop.f32.mrf.mxu0 }
  0xdb   :  { %1287 = vtanh.f32 %v175_v9 }
  0xe8   :  { %v1288_v11 = vpop.eup %1287 }
  0xe9   :  { %181 = vrot.lane.b32.xlu0 %v1288_v11, %s1344_s12  ;;  %v177_v12 = vmul.f32 0.5, %v1288_v11 }
  0xeb   :  { %v178_v13 = vadd.f32 0.5, %v177_v12 }
  0xed   :  { %v179_v16 = vmul.f32 0.0, %v178_v13 }
 0x15b   :  { %v182_v14 = vpop.permute.xlu0 %181 }
 0x15c   :  { %v184_v15 = vmul.f32 %v182_v14, %v178_v13 }
 0x15e   :  { %186 = vrot.lane.b32.xlu0 %v184_v15, %s1345_s13  ;;  %v70_v15 = vld [vmem:[%s69_s17] sm:$0x1] }
 0x15f   :  { %71 = vst [vmem:[#allocation2 + $0x20] sm:$0x1] %v70_v15 }
 0x1d0   :  { %v187_v17 = vpop.permute.xlu0 %186 }
 0x1d1   :  { %v189_v18 = vadd.f32 %v187_v17, %v179_v16  ;;  %v74_v16 = vld [vmem:[%s73_s20] sm:$0x1] }
 0x1d2   :  { %75 = vst [vmem:[#allocation2 + $0x21] sm:$0x1] %v74_v16 }
 0x1d3   :  { %1289 = vtanh.f32 %v189_v18 }
 0x1d9   :  { %v498_v20 = vld [vmem:[#allocation2 + $0x20] sm:$0xff] }
 0x1e0   :  { %v1290_v19 = vpop.eup %1289 }
 0x1e1   :  { %192 = vrot.lane.b32.xlu1 %v1290_v19, %s1344_s12 }
 0x253   :  { %v193_v22 = vpop.permute.xlu1 %192 }
 0x254   :  { %v195_v23 = vmul.f32 %v193_v22, %v178_v13 }
 0x256   :  { %197 = vrot.lane.b32.xlu1 %v195_v23, %s1345_s13 }
 0x2c8   :  { %v198_v24 = vpop.permute.xlu1 %197 }
 0x2c9   :  { %200 = vst.msk [vmem:[#allocation3] sm:$0xff] %vm101_vm1, %v198_v24  ;;  %1203 = vmatmul.mubr.msk.f32.vlgmr.msra.gmra.mxu1 %vm101_vm1, %v198_v24 }
 0x2ca   :  { %1217 = vmatpush3.msra.mxu1 %v1382_v0  ;;  %1224 = vmatprep.mubr.msk.f32.mxu1 %vm1343_vm0, %v1342_v1 }
 0x2cb   :  { %1218 = vmatprep.subr.mxu1 %v1342_v1 }
 0x2cc   :  { %1219 = vmatpush3.msra.mxu1 %v1396_v2 }
 0x2cd   :  { %1220 = vmatprep.subr.mxu1 %v1342_v1 }
 0x2ce   :  { %1221 = vmatpush3.msra.mxu1 %v1406_v3 }
 0x2cf   :  { %1222 = vmatprep.subr.mxu1 %v1342_v1 }
 0x2d0   :  { %1223 = vmatpush3.msra.mxu1 %v1415_v4 }
 0x2d1   :  { %1238 = vmatprep.subr.mxu1 %v1342_v1 }
 0x389   :  { %v270_v26 = vpop.f32.mrf.mxu1 }
 0x38a   :  { %v274_v27 = vadd.f32 %v270_v26, %v201_v25 }
 0x38b   :  { %v1204_v28 = vpop.f32.mrf.mxu1 }
 0x38c   :  { %1291 = vtanh.f32 %v274_v27 }
 0x399   :  { %v1292_v29 = vpop.eup %1291 }
 0x39a   :  { %280 = vrot.lane.b32.xlu0 %v1292_v29, %s1344_s12  ;;  %v276_v30 = vmul.f32 0.5, %v1292_v29 }
 0x39c   :  { %v277_v31 = vadd.f32 0.5, %v276_v30 }
 0x39e   :  { %v278_v34 = vmul.f32 %v277_v31, %v189_v18 }
 0x40c   :  { %v281_v32 = vpop.permute.xlu0 %280 }
 0x40d   :  { %v283_v33 = vmul.f32 %v281_v32, %v277_v31 }
 0x40f   :  { %285 = vrot.lane.b32.xlu1 %v283_v33, %s1345_s13  ;;  %v78_v33 = vld [vmem:[%s77_s0] sm:$0x1] }
 0x410   :  { %79 = vst [vmem:[#allocation2 + $0x28] sm:$0x1] %v78_v33 }
 0x481   :  { %v286_v35 = vpop.permute.xlu1 %285 }
 0x482   :  { %v288_v36 = vadd.f32 %v286_v35, %v278_v34  ;;  %v82_v34 = vld [vmem:[%s81_s27] sm:$0x1] }
 0x483   :  { %83 = vst [vmem:[#allocation2 + $0x29] sm:$0x1] %v82_v34 }
 0x484   :  { %1293 = vtanh.f32 %v288_v36 }
 0x48a   :  { %v597_v38 = vld [vmem:[#allocation2 + $0x28] sm:$0xff] }
 0x491   :  { %v1294_v37 = vpop.eup %1293 }
 0x492   :  { %291 = vrot.lane.b32.xlu0 %v1294_v37, %s1344_s12 }
 0x504   :  { %v292_v40 = vpop.permute.xlu0 %291 }
 0x505   :  { %v294_v41 = vmul.f32 %v292_v40, %v277_v31 }
 0x507   :  { %296 = vrot.lane.b32.xlu1 %v294_v41, %s1345_s13 }
 0x579   :  { %v297_v42 = vpop.permute.xlu1 %296 }
 0x57a   :  { %299 = vst.msk [vmem:[#allocation3 + $0x8] sm:$0xff] %vm101_vm1, %v297_v42  ;;  %1214 = vmatmul.mubr.msk.f32.vlgmr.msra.gmra.mxu0 %vm101_vm1, %v297_v42 }
 0x57b   :  { %1228 = vmatpush3.msra.mxu0 %v1382_v0  ;;  %1235 = vmatprep.mubr.msk.f32.mxu0 %vm1343_vm0, %v1342_v1 }
 0x57c   :  { %1229 = vmatprep.subr.mxu0 %v1342_v1 }
 0x57d   :  { %1230 = vmatpush3.msra.mxu0 %v1396_v2 }
 0x57e   :  { %1231 = vmatprep.subr.mxu0 %v1342_v1 }
 0x57f   :  { %1232 = vmatpush3.msra.mxu0 %v1406_v3 }
 0x580   :  { %1233 = vmatprep.subr.mxu0 %v1342_v1 }
 0x581   :  { %1234 = vmatpush3.msra.mxu0 %v1415_v4 }
 0x582   :  { %1249 = vmatprep.subr.mxu0 %v1342_v1 }
 0x63a   :  { %v369_v44 = vpop.f32.mrf.mxu0 }
 0x63b   :  { %v373_v45 = vadd.f32 %v369_v44, %v300_v43 }
 0x63c   :  { %v1215_v46 = vpop.f32.mrf.mxu0 }
 0x63d   :  { %1295 = vtanh.f32 %v373_v45 }
 0x64a   :  { %v1296_v47 = vpop.eup %1295 }
 0x64b   :  { %379 = vrot.lane.b32.xlu0 %v1296_v47, %s1344_s12  ;;  %v375_v48 = vmul.f32 0.5, %v1296_v47  ;;  %v90_v47 = vld [vmem:[%s89_s10] sm:$0x1] }
 0x64c   :  { %91 = vst [vmem:[#allocation2 + $0x31] sm:$0x1] %v90_v47 }
 0x64d   :  { %v376_v49 = vadd.f32 0.5, %v375_v48 }
 0x64f   :  { %v377_v52 = vmul.f32 %v376_v49, %v288_v36 }
 0x6bd   :  { %v380_v50 = vpop.permute.xlu0 %379 }
 0x6be   :  { %v382_v51 = vmul.f32 %v380_v50, %v376_v49 }
 0x6c0   :  { %384 = vrot.lane.b32.xlu1 %v382_v51, %s1345_s13 }
 0x732   :  { %v385_v53 = vpop.permute.xlu1 %384 }
 0x733   :  { %v387_v54 = vadd.f32 %v385_v53, %v377_v52 }
 0x735   :  { %1297 = vtanh.f32 %v387_v54 }
 0x742   :  { %v1298_v55 = vpop.eup %1297 }
 0x743   :  { %390 = vrot.lane.b32.xlu0 %v1298_v55, %s1344_s12 }
 0x7b5   :  { %v391_v58 = vpop.permute.xlu0 %390 }
 0x7b6   :  { %v393_v59 = vmul.f32 %v391_v58, %v376_v49 }
 0x7b8   :  { %395 = vrot.lane.b32.xlu1 %v393_v59, %s1345_s13 }
 0x82a   :  { %v396_v60 = vpop.permute.xlu1 %395 }
 0x82b   :  { %398 = vst.msk [vmem:[#allocation3 + $0x10] sm:$0xff] %vm101_vm1, %v396_v60  ;;  %1225 = vmatmul.mubr.msk.f32.vlgmr.msra.gmra.mxu1 %vm101_vm1, %v396_v60 }
 0x82c   :  { %1239 = vmatpush3.msra.mxu1 %v1382_v0  ;;  %1246 = vmatprep.mubr.msk.f32.mxu1 %vm1343_vm0, %v1342_v1 }
 0x82d   :  { %1240 = vmatprep.subr.mxu1 %v1342_v1 }
 0x82e   :  { %1241 = vmatpush3.msra.mxu1 %v1396_v2 }
 0x82f   :  { %1242 = vmatprep.subr.mxu1 %v1342_v1 }
 0x830   :  { %1243 = vmatpush3.msra.mxu1 %v1406_v3 }
 0x831   :  { %1244 = vmatprep.subr.mxu1 %v1342_v1 }
 0x832   :  { %1245 = vmatpush3.msra.mxu1 %v1415_v4  ;;  %v904_v33 = vld [vmem:[#allocation3 + $0x11] sm:$0x1] }
 0x833   :  { %1260 = vmatprep.subr.mxu1 %v1342_v1 }
 0x8eb   :  { %v468_v62 = vpop.f32.mrf.mxu1 }
 0x8ec   :  { %v472_v63 = vadd.f32 %v468_v62, %v399_v61 }
 0x8ed   :  { %v1226_v5 = vpop.f32.mrf.mxu1 }
 0x8ee   :  { %1299 = vtanh.f32 %v472_v63  ;;  %v94_v5 = vld [vmem:[%s93_s16] sm:$0x1] }
 0x8ef   :  { %95 = vst [vmem:[#allocation2 + $0x38] sm:$0x1] %v94_v5 }
 0x8fb   :  { %v1300_v6 = vpop.eup %1299 }
 0x8fc   :  { %478 = vrot.lane.b32.xlu0 %v1300_v6, %s1344_s12  ;;  %v474_v7 = vmul.f32 0.5, %v1300_v6  ;;  %v98_v6 = vld [vmem:[%s97_s19] sm:$0x1] }
 0x8fd   :  { %99 = vst [vmem:[#allocation2 + $0x39] sm:$0x1] %v98_v6 }
 0x8fe   :  { %v475_v8 = vadd.f32 0.5, %v474_v7 }
 0x900   :  { %v476_v11 = vmul.f32 %v475_v8, %v387_v54 }
 0x96e   :  { %v479_v9 = vpop.permute.xlu0 %478 }
 0x96f   :  { %v481_v10 = vmul.f32 %v479_v9, %v475_v8 }
 0x971   :  { %483 = vrot.lane.b32.xlu1 %v481_v10, %s1345_s13  ;;  %v795_v10 = vld [vmem:[#allocation2 + $0x38] sm:$0xff] }
 0x9e3   :  { %v484_v12 = vpop.permute.xlu1 %483 }
 0x9e4   :  { %v486_v13 = vadd.f32 %v484_v12, %v476_v11 }
 0x9e6   :  { %1301 = vtanh.f32 %v486_v13 }
 0x9f3   :  { %v1302_v14 = vpop.eup %1301 }
 0x9f4   :  { %489 = vrot.lane.b32.xlu0 %v1302_v14, %s1344_s12 }
 0xa66   :  { %v490_v17 = vpop.permute.xlu0 %489 }
 0xa67   :  { %v492_v18 = vmul.f32 %v490_v17, %v475_v8 }
 0xa69   :  { %494 = vrot.lane.b32.xlu1 %v492_v18, %s1345_s13 }
 0xadb   :  { %v495_v19 = vpop.permute.xlu1 %494 }
 0xadc   :  { %497 = vst.msk [vmem:[#allocation3 + $0x18] sm:$0xff] %vm101_vm1, %v495_v19  ;;  %1236 = vmatmul.mubr.msk.f32.vlgmr.msra.gmra.mxu0 %vm101_vm1, %v495_v19 }
 0xadd   :  { %1250 = vmatpush3.msra.mxu0 %v1382_v0  ;;  %1257 = vmatprep.mubr.msk.f32.mxu0 %vm1343_vm0, %v1342_v1 }
 0xade   :  { %1251 = vmatprep.subr.mxu0 %v1342_v1 }
 0xadf   :  { %1252 = vmatpush3.msra.mxu0 %v1396_v2 }
 0xae0   :  { %1253 = vmatprep.subr.mxu0 %v1342_v1 }
 0xae1   :  { %1254 = vmatpush3.msra.mxu0 %v1406_v3 }
 0xae2   :  { %1255 = vmatprep.subr.mxu0 %v1342_v1 }
 0xae3   :  { %1256 = vmatpush3.msra.mxu0 %v1415_v4 }
 0xb9c   :  { %v567_v21 = vpop.f32.mrf.mxu0 }
 0xb9d   :  { %v571_v22 = vadd.f32 %v567_v21, %v498_v20 }
 0xb9e   :  { %v1237_v23 = vpop.f32.mrf.mxu0 }
 0xb9f   :  { %1303 = vtanh.f32 %v571_v22  ;;  %v976_v23 = vld [vmem:[%s1619_s3 + $0x18] sm:$0xff] }
 0xba0   :  { %1271 = vmatprep.subr.mxu0 %v976_v23 }
 0xbac   :  { %v1304_v24 = vpop.eup %1303 }
 0xbad   :  { %577 = vrot.lane.b32.xlu0 %v1304_v24, %s1344_s12  ;;  %v573_v25 = vmul.f32 0.5, %v1304_v24  ;;  %v975_v24 = vld [vmem:[%s1619_s3 + $0x10] sm:$0xff] }
 0xbaf   :  { %v574_v26 = vadd.f32 0.5, %v573_v25  ;;  %v974_v25 = vld [vmem:[%s1619_s3 + $0x8] sm:$0xff] }
 0xbb1   :  { %v575_v29 = vmul.f32 %v574_v26, %v486_v13 }
 0xc1f   :  { %v578_v27 = vpop.permute.xlu0 %577 }
 0xc20   :  { %v580_v28 = vmul.f32 %v578_v27, %v574_v26 }
 0xc22   :  { %582 = vrot.lane.b32.xlu1 %v580_v28, %s1345_s13 }
 0xc94   :  { %v583_v30 = vpop.permute.xlu1 %582 }
 0xc95   :  { %v585_v31 = vadd.f32 %v583_v30, %v575_v29  ;;  %v895_v29 = vld [vmem:[#allocation3 + $0x8] sm:$0x1]  ;;  %v903_v30 = vld [vmem:[#allocation3 + $0x9] sm:$0x1] }
 0xc97   :  { %1305 = vtanh.f32 %v585_v31 }
 0xca4   :  { %v1306_v32 = vpop.eup %1305 }
 0xca5   :  { %588 = vrot.lane.b32.xlu0 %v1306_v32, %s1344_s12  ;;  %v911_v32 = vrot.slane %v895_v29, 7 }
 0xd17   :  { %v589_v35 = vpop.permute.xlu0 %588 }
 0xd18   :  { %v591_v36 = vmul.f32 %v589_v35, %v574_v26  ;;  %v973_v26 = vld [vmem:[%s1619_s3] sm:$0xff] }
 0xd19   :  { %v894_v35 = vld [vmem:[#allocation3] sm:$0x1] }
 0xd1a   :  { %593 = vrot.lane.b32.xlu1 %v591_v36, %s1345_s13  ;;  %v897_v36 = vld [vmem:[#allocation3 + $0x18] sm:$0x1] }
 0xd8c   :  { %v594_v37 = vpop.permute.xlu1 %593 }
 0xd8d   :  { %596 = vst.msk [vmem:[#allocation3 + $0x20] sm:$0xff] %vm101_vm1, %v594_v37  ;;  %1247 = vmatmul.mubr.msk.f32.vlgmr.msra.gmra.mxu1 %vm101_vm1, %v594_v37  ;;  %v905_v37 = vld [vmem:[#allocation3 + $0x19] sm:$0x1] }
 0xd8e   :  { %1261 = vmatpush3.msra.mxu1 %v1382_v0  ;;  %1268 = vmatprep.mubr.msk.f32.mxu1 %vm1343_vm0, %v1342_v1 }
 0xd8f   :  { %1262 = vmatprep.subr.mxu1 %v1342_v1 }
 0xd90   :  { %1263 = vmatpush3.msra.mxu1 %v1396_v2 }
 0xd91   :  { %1264 = vmatprep.subr.mxu1 %v1342_v1 }
 0xd92   :  { %1265 = vmatpush3.msra.mxu1 %v1406_v3 }
 0xd93   :  { %1266 = vmatprep.subr.mxu1 %v1342_v1 }
 0xd94   :  { %1267 = vmatpush3.msra.mxu1 %v1415_v4  ;;  %v86_v4 = vld [vmem:[%s85_s7] sm:$0x1] }
 0xd95   :  { %87 = vst [vmem:[#allocation2 + $0x30] sm:$0x1] %v86_v4 }
 0xd9c   :  { %v696_v51 = vld [vmem:[#allocation2 + $0x30] sm:$0xff] }
 0xe4d   :  { %v666_v39 = vpop.f32.mrf.mxu1 }
 0xe4e   :  { %v670_v40 = vadd.f32 %v666_v39, %v597_v38  ;;  %v932_v38 = vrot.slane %v903_v30, 7  ;;  %v898_v39 = vld [vmem:[#allocation3 + $0x20] sm:$0x1] }
 0xe4f   :  { %v1248_v41 = vpop.f32.mrf.mxu1  ;;  %v920_v4 = vrot.slane %v898_v39, 4 }
 0xe50   :  { %1307 = vtanh.f32 %v670_v40  ;;  %v902_v41 = vld [vmem:[#allocation3 + $0x1] sm:$0x1] }
 0xe5d   :  { %v1308_v0 = vpop.eup %1307 }
 0xe5e   :  { %676 = vrot.lane.b32.xlu0 %v1308_v0, %s1344_s12  ;;  %v672_v42 = vmul.f32 0.5, %v1308_v0  ;;  %v906_v0 = vld [vmem:[#allocation3 + $0x21] sm:$0x1] }
 0xe5f   :  { %v941_v47 = vrot.slane %v906_v0, 4 }
 0xe60   :  { %v673_v43 = vadd.f32 0.5, %v672_v42 }
 0xe62   :  { %v674_v45 = vmul.f32 %v673_v43, %v585_v31  ;;  %v896_v31 = vld [vmem:[#allocation3 + $0x10] sm:$0x1] }
 0xe63   :  { %v914_v40 = vrot.slane %v896_v31, 6 }
 0xed0   :  { %v677_v44 = vpop.permute.xlu0 %676 }
 0xed1   :  { %v679_v2 = vmul.f32 %v677_v44, %v673_v43  ;;  %v935_v44 = vrot.slane %v904_v33, 6 }
 0xed3   :  { %681 = vrot.lane.b32.xlu1 %v679_v2, %s1345_s13 }
 0xf45   :  { %v682_v3 = vpop.permute.xlu1 %681 }
 0xf46   :  { %v684_v46 = vadd.f32 %v682_v3, %v674_v45  ;;  %v917_v45 = vrot.slane %v897_v36, 5  ;;  %v953_v3 = vsel %vm952_vm2, %v894_v35, %v911_v32 }
 0xf48   :  { %1309 = vtanh.f32 %v684_v46 }
 0xf55   :  { %v1310_v1 = vpop.eup %1309 }
 0xf56   :  { %687 = vrot.lane.b32.xlu0 %v1310_v1, %s1344_s12  ;;  %v938_v1 = vrot.slane %v905_v37, 5 }
 0xfc8   :  { %v688_v48 = vpop.permute.xlu0 %687 }
 0xfc9   :  { %v690_v49 = vmul.f32 %v688_v48, %v673_v43  ;;  %v966_v48 = vsel %vm952_vm2, %v902_v41, %v932_v38 }
 0xfcb   :  { %692 = vrot.lane.b32.xlu1 %v690_v49, %s1345_s13 }
0x103d   :  { %v693_v50 = vpop.permute.xlu1 %692 }
0x103e   :  { %695 = vst.msk [vmem:[#allocation3 + $0x28] sm:$0xff] %vm101_vm1, %v693_v50  ;;  %1258 = vmatmul.mubr.msk.f32.vlgmr.msra.gmra.mxu0 %vm101_vm1, %v693_v50  ;;  %v955_v50 = vsel %vm954_vm3, %v953_v3, %v914_v40 }
0x103f   :  { %1272 = vmatpush3.msra.mxu0 %v976_v23 }
0x1040   :  { %1273 = vmatprep.subr.mxu0 %v975_v24 }
0x1041   :  { %1274 = vmatpush3.msra.mxu0 %v975_v24 }
0x1042   :  { %1275 = vmatprep.subr.mxu0 %v974_v25 }
0x1043   :  { %1276 = vmatpush3.msra.mxu0 %v974_v25 }
0x1044   :  { %1277 = vmatprep.subr.mxu0 %v973_v26 }
0x1045   :  { %1278 = vmatpush3.msra.mxu0 %v973_v26  ;;  %v899_v42 = vld [vmem:[#allocation3 + $0x28] sm:$0x1]  ;;  %v907_v43 = vld [vmem:[#allocation3 + $0x29] sm:$0x1] }
0x1046   :  { %v923_v49 = vrot.slane %v899_v42, 3 }
0x10fe   :  { %v765_v52 = vpop.f32.mrf.mxu0 }
0x10ff   :  { %v769_v53 = vadd.f32 %v765_v52, %v696_v51  ;;  %v944_v51 = vrot.slane %v907_v43, 3 }
0x1100   :  { %v1259_v54 = vpop.f32.mrf.mxu0 }
0x1101   :  { %1311 = vtanh.f32 %v769_v53  ;;  %v967_v54 = vsel %vm954_vm3, %v966_v48, %v935_v44 }
0x110e   :  { %v1312_v55 = vpop.eup %1311 }
0x110f   :  { %775 = vrot.lane.b32.xlu0 %v1312_v55, %s1344_s12  ;;  %v771_v56 = vmul.f32 0.5, %v1312_v55  ;;  %v957_v55 = vsel %vm956_vm4, %v955_v50, %v917_v45 }
0x1111   :  { %v772_v57 = vadd.f32 0.5, %v771_v56  ;;  %v968_v56 = vsel %vm956_vm4, %v967_v54, %v938_v1 }
0x1113   :  { %v773_v60 = vmul.f32 %v772_v57, %v684_v46 }
0x1181   :  { %v776_v58 = vpop.permute.xlu0 %775 }
0x1182   :  { %v778_v59 = vmul.f32 %v776_v58, %v772_v57  ;;  %v959_v58 = vsel %vm958_vm5, %v957_v55, %v920_v4 }
0x1184   :  { %780 = vrot.lane.b32.xlu1 %v778_v59, %s1345_s13 }
0x11f6   :  { %v781_v61 = vpop.permute.xlu1 %780 }
0x11f7   :  { %v783_v62 = vadd.f32 %v781_v61, %v773_v60  ;;  %v969_v60 = vsel %vm958_vm5, %v968_v56, %v941_v47 }
0x11f8   :  { %v970_v5 = vsel %vm960_vm6, %v969_v60, %v944_v51 }
0x11f9   :  { %1313 = vtanh.f32 %v783_v62 }
0x1206   :  { %v1314_v63 = vpop.eup %1313 }
0x1207   :  { %786 = vrot.lane.b32.xlu0 %v1314_v63, %s1344_s12 }
0x1279   :  { %v787_v7 = vpop.permute.xlu0 %786 }
0x127a   :  { %v789_v8 = vmul.f32 %v787_v7, %v772_v57 }
0x127c   :  { %791 = vrot.lane.b32.xlu1 %v789_v8, %s1345_s13 }
0x12ee   :  { %v792_v9 = vpop.permute.xlu1 %791 }
0x12ef   :  { %794 = vst.msk [vmem:[#allocation3 + $0x30] sm:$0xff] %vm101_vm1, %v792_v9  ;;  %1269 = vmatmul.mubr.msk.f32.vlgmr.msra.gmra.mxu1 %vm101_vm1, %v792_v9 }
0x12f6   :  { %v900_v2 = vld [vmem:[#allocation3 + $0x30] sm:$0x1]  ;;  %v908_v46 = vld [vmem:[#allocation3 + $0x31] sm:$0x1] }
0x12f7   :  { %v926_v52 = vrot.slane %v900_v2, 2  ;;  %v947_v53 = vrot.slane %v908_v46, 2 }
0x12f9   :  { %v971_v7 = vsel %vm962_vm7, %v970_v5, %v947_v53 }
0x13af   :  { %v864_v11 = vpop.f32.mrf.mxu1 }
0x13b0   :  { %v868_v12 = vadd.f32 %v864_v11, %v795_v10  ;;  %v1134_v10 = vld [vmem:[%s1620_s4] ss:$0 sm:$0xff] }
0x13b1   :  { %v1270_v13 = vpop.f32.mrf.mxu1 }
0x13b2   :  { %1315 = vtanh.f32 %v868_v12 }
0x13bf   :  { %v1316_v14 = vpop.eup %1315 }
0x13c0   :  { %874 = vrot.lane.b32.xlu0 %v1316_v14, %s1344_s12  ;;  %v870_v15 = vmul.f32 0.5, %v1316_v14 }
0x13c2   :  { %v871_v16 = vadd.f32 0.5, %v870_v15 }
0x13c4   :  { %v872_v19 = vmul.f32 %v871_v16, %v783_v62  ;;  %v961_v62 = vsel %vm960_vm6, %v959_v58, %v923_v49 }
0x13c5   :  { %v963_v6 = vsel %vm962_vm7, %v961_v62, %v926_v52 }
0x1432   :  { %v875_v17 = vpop.permute.xlu0 %874 }
0x1433   :  { %v877_v18 = vmul.f32 %v875_v17, %v871_v16 }
0x1435   :  { %879 = vrot.lane.b32.xlu1 %v877_v18, %s1345_s13 }
0x14a7   :  { %v880_v20 = vpop.permute.xlu1 %879 }
0x14a8   :  { %v882_v21 = vadd.f32 %v880_v20, %v872_v19 }
0x14aa   :  { %1317 = vtanh.f32 %v882_v21 }
0x14b7   :  { %v1318_v22 = vpop.eup %1317 }
0x14b8   :  { %885 = vrot.lane.b32.xlu0 %v1318_v22, %s1344_s12 }
0x152a   :  { %v886_v27 = vpop.permute.xlu0 %885 }
0x152b   :  { %v888_v28 = vmul.f32 %v886_v27, %v871_v16 }
0x152d   :  { %890 = vrot.lane.b32.xlu1 %v888_v28, %s1345_s13 }
0x159f   :  { %v891_v34 = vpop.permute.xlu1 %890 }
0x15a0   :  { %893 = vst.msk [vmem:[#allocation3 + $0x38] sm:$0xff] %vm101_vm1, %v891_v34 }
0x15a7   :  { %v901_v57 = vld [vmem:[#allocation3 + $0x38] sm:$0x1]  ;;  %v909_v59 = vld [vmem:[#allocation3 + $0x39] sm:$0x1] }
0x15a8   :  { %v929_v61 = vrot.slane %v901_v57, 1  ;;  %v950_v63 = vrot.slane %v909_v59, 1 }
0x15aa   :  { %v965_v8 = vsel %vm964_vm8, %v963_v6, %v929_v61  ;;  %v972_v9 = vsel %vm964_vm8, %v971_v7, %v950_v63 }
0x15ab   :  { %1279 = vmatprep.mubr.msk.f32.mxu0 %vm101_vm1, %v965_v8 }
0x15ac   :  { %1280 = vmatmul.mubr.msk.f32.vlgmr.msra.gmra.mxu0 %vm101_vm1, %v972_v9 }
0x166c   :  { %v1281_v11 = vpop.f32.mrf.mxu0 }
0x166d   :  { %v1062_v12 = vadd.f32 %v1281_v11, %v1134_v10 }
0x166e   :  { %v1056_v13 = vpop.f32.mrf.mxu0 }
0x166f   :  { %v1057_v14 = vadd.f32 %v1134_v10, %v1056_v13  ;;  %v1069_v15 = vsel %vm1065_vm9, %v1062_v12, -inf }
0x1670   :  { %1070 = vmax.xlane.f32.xlu1 %v1069_v15 }
0x1671   :  { %v1066_v16 = vsel %vm1065_vm9, %v1057_v14, -inf }
0x1672   :  { %1067 = vmax.xlane.f32.xlu0 %v1066_v16 }
0x16f9   :  { %v1071_v17 = vpop.xlane.xlu1 %1070 }
0x16fa   :  { %v1073_v18 = vsub.f32 %v1062_v12, %v1071_v17 }
0x16fb   :  { %v1068_v19 = vpop.xlane.xlu0 %1067 }
0x16fc   :  { %v1072_v20 = vsub.f32 %v1057_v14, %v1068_v19  ;;  %v1076_v21 = vmul.f32 1.442695, %v1073_v18 }
0x16fe   :  { %v1074_v22 = vmul.f32 1.442695, %v1072_v20 }
0x1700   :  { %1319 = vpow2.f32 %v1074_v22 }
0x1701   :  { %1321 = vpow2.f32 %v1076_v21 }
0x170d   :  { %v1320_v23 = vpop.eup %1319 }
0x170e   :  { %v1078_v24 = vsel %vm1065_vm9, %v1320_v23, 0.0  ;;  %v1322_v25 = vpop.eup %1321 }
0x170f   :  { %1079 = vadd.xlane.f32.xlu0 %v1078_v24  ;;  %v1081_v26 = vsel %vm1065_vm9, %v1322_v25, 0.0 }
0x1713   :  { %1082 = vadd.xlane.f32.xlu0 %v1081_v26 }
0x1798   :  { %v1080_v27 = vpop.xlane.xlu0 %1079 }
0x1799   :  { %1323 = vlog2.f32 %v1080_v27 }
0x179c   :  { %v1083_v28 = vpop.xlane.xlu0 %1082 }
0x179d   :  { %1325 = vlog2.f32 %v1083_v28 }
0x17a6   :  { %v1324_v29 = vpop.eup %1323 }
0x17a7   :  { %v1085_v30 = vmul.f32 0.6931472, %v1324_v29 }
0x17a9   :  { %v1088_v31 = vsub.f32 %v1072_v20, %v1085_v30 }
0x17aa   :  { %v1326_v32 = vpop.eup %1325 }
0x17ab   :  { %1090 = vst.msk [vmem:[%s1621_s5] sm:$0xff] %vm1065_vm9, %v1088_v31  ;;  %v1087_v33 = vmul.f32 0.6931472, %v1326_v32 }
0x17ad   :  { %v1089_v34 = vsub.f32 %v1073_v18, %v1087_v33 }
0x17af   :  { %1091 = vst.msk [vmem:[%s1621_s5 + $0x8] sm:$0xff] %vm1065_vm9, %v1089_v34 }

</bundles_post_ra>
